<compile_context>
chip_gen: v7x
topology: tpu7x:2x2x1
jax: 0.10.0
libtpu: 0.0.40
codegen_flags: <defaults>
</compile_context>

<pallas_src>
import functools

import jax
import jax.numpy as jnp
import numpy as np
from jax.experimental import pallas as pl
from jax.experimental.pallas import tpu as pltpu


# ----------------------------------------------------------------------------
# helpers
# ----------------------------------------------------------------------------
def _round_up(x, m):
    return ((x + m - 1) // m) * m


_GATE_ORDER = np.array([0, 1, 3, 2])  # PyTorch (i, f, g, o) -> (i, f, o, g)


# ----------------------------------------------------------------------------
# fused Pallas kernel: all LSTM layers + FC head
# ----------------------------------------------------------------------------
def _make_fused_lstm_kernel(T, Bb, H, LA, num_layers, Op):
    unroll = T if T <= 16 else 8

    def kernel(*refs):
        x_ref = refs[0]                                     # (T, Bb, Din) f32
        layer_refs = refs[1:1 + 3 * num_layers]             # (wih_t, whh_t, bias)*
        fc_w_ref = refs[1 + 3 * num_layers]                 # (H, Op)  bf16
        fc_b_ref = refs[2 + 3 * num_layers]                 # (1, Op)  f32
        y_ref, h_n_ref, c_n_ref = refs[3 + 3 * num_layers:6 + 3 * num_layers]
        gates_sc, seq_a, seq_b = refs[6 + 3 * num_layers:]  # scratches
        seq_bufs = (seq_a, seq_b)

        for l in range(num_layers):
            wih_ref = layer_refs[3 * l + 0]                 # (Din|H, G4) bf16
            whh_ref = layer_refs[3 * l + 1]                 # (H, G4)    bf16
            b_ref = layer_refs[3 * l + 2]                   # (1, G4)    f32
            dst = seq_bufs[l % 2]                           # ping-pong output

            # Hoisted input projection: one bf16 MXU matmul over the whole
            # sequence (no serial dependence), f32 accumulation in VMEM.
            if l == 0:
                xin = x_ref[...].reshape(T * Bb, -1).astype(jnp.bfloat16)
            else:
                xin = seq_bufs[(l - 1) % 2][...].astype(jnp.bfloat16)
            gates_sc[...] = (
                jnp.dot(xin, wih_ref[...], preferred_element_type=jnp.float32)
                + b_ref[...])

            whh = whh_ref[...]                              # hoisted weight load

            def step(t, hc, whh=whh, dst=dst):
                h, c = hc                                   # f32 loop carries
                r = pl.multiple_of(t * Bb, Bb)              # sublane-aligned row
                g = gates_sc[pl.ds(r, Bb), :] + jnp.dot(
                    h.astype(jnp.bfloat16), whh,
                    preferred_element_type=jnp.float32)
                # gate order (i, f, o, g): one contiguous sigmoid slab + tanh,
                # all elementwise math kept in f32 (v5e-safe).
                sig = jax.nn.sigmoid(g[:, :3 * H])
                g_g = jnp.tanh(g[:, 3 * H:4 * H])
                i_g = sig[:, 0 * H:1 * H]
                f_g = sig[:, 1 * H:2 * H]
                o_g = sig[:, 2 * H:3 * H]
                c_new = f_g * c + i_g * g_g
                h_new = o_g * jnp.tanh(c_new)
                dst[pl.ds(r, Bb), :] = h_new                # single store / step
                return (h_new, c_new)

            zeros = jnp.zeros((Bb, H), jnp.float32)
            h_T, c_T = jax.lax.fori_loop(0, T, step, (zeros, zeros),
                                         unroll=unroll)
            h_n_ref[l] = h_T
            c_n_ref[l] = c_T

        # FC head fused: only the last `lookahead` timesteps of the final layer.
        last = seq_bufs[(num_layers - 1) % 2]
        tail = last[pl.ds((T - LA) * Bb, LA * Bb), :]       # (LA*Bb, H) f32
        y = (jnp.dot(tail.astype(jnp.bfloat16), fc_w_ref[...],
                     preferred_element_type=jnp.float32) + fc_b_ref[...])
        y_ref[...] = y.reshape(LA, Bb, Op)

    return kernel


def fused_lstm_forward(x_tm, layer_params, fc_w_t, fc_b, *,
                       T, Bp, Bb, LA, num_layers, H, G4, Op):
    NB = Bp // Bb
    Din = x_tm.shape[-1]
    kernel = _make_fused_lstm_kernel(T, Bb, H, LA, num_layers, Op)

    in_arrays = [x_tm]
    in_specs = [pl.BlockSpec((T, Bb, Din), lambda i: (0, i, 0))]
    for lp in layer_params:
        for name in ("wih_t", "whh_t", "bias"):
            arr = lp[name]
            in_arrays.append(arr)
            in_specs.append(pl.BlockSpec(arr.shape, lambda i: (0, 0)))
    in_arrays += [fc_w_t, fc_b]
    in_specs += [pl.BlockSpec(fc_w_t.shape, lambda i: (0, 0)),
                 pl.BlockSpec(fc_b.shape, lambda i: (0, 0))]

    out_shapes = (
        jax.ShapeDtypeStruct((LA, Bp, Op), jnp.float32),
        jax.ShapeDtypeStruct((num_layers, Bp, H), jnp.float32),
        jax.ShapeDtypeStruct((num_layers, Bp, H), jnp.float32),
    )
    out_specs = [
        pl.BlockSpec((LA, Bb, Op), lambda i: (0, i, 0)),
        pl.BlockSpec((num_layers, Bb, H), lambda i: (0, i, 0)),
        pl.BlockSpec((num_layers, Bb, H), lambda i: (0, i, 0)),
    ]
    scratch_shapes = [
        pltpu.VMEM((T * Bb, G4), jnp.float32),    # hoisted gates (x@W_ih + b)
        pltpu.VMEM((T * Bb, H), jnp.float32),     # layer output seq (ping)
        pltpu.VMEM((T * Bb, H), jnp.float32),     # layer output seq (pong)
    ]

    # Explicit VMEM limit: ~2x footprint (inputs/outputs are double-buffered
    # by BlockSpec) + headroom, clamped to [32 MiB, 56 MiB] so it is above the
    # per-chip scoped default yet under v7x's 64 MiB physical capacity.
    def nbytes(shape, dt):
        return int(np.prod(shape)) * jnp.dtype(dt).itemsize
    block_bytes = nbytes((T, Bb, Din), x_tm.dtype)
    block_bytes += sum(nbytes(a.shape, a.dtype) for a in in_arrays[1:])
    block_bytes += nbytes((LA, Bb, Op), jnp.float32)
    block_bytes += 2 * nbytes((num_layers, Bb, H), jnp.float32)
    scratch_bytes = (nbytes((T * Bb, G4), jnp.float32)
                     + 2 * nbytes((T * Bb, H), jnp.float32))
    vmem_limit = int(min(max(4 * block_bytes + 2 * scratch_bytes + (8 << 20),
                             32 << 20), 56 << 20))

    return pl.pallas_call(
        kernel,
        out_shape=out_shapes,
        grid_spec=pltpu.PrefetchScalarGridSpec(
            num_scalar_prefetch=0,
            grid=(NB,),
            in_specs=in_specs,
            out_specs=out_specs,
            scratch_shapes=scratch_shapes,
        ),
        compiler_params=pltpu.CompilerParams(
            dimension_semantics=("parallel",),
            vmem_limit_bytes=vmem_limit),
    )(*in_arrays)


# ----------------------------------------------------------------------------
# parameters (raw PyTorch layout) + kernel-layout preparation
# ----------------------------------------------------------------------------
def init_params(key, input_dim, hidden_dim, num_layers, output_dim):
    """Raw weights in PyTorch nn.LSTM / nn.Linear layout."""
    params = {"layers": []}
    k = 1.0 / np.sqrt(hidden_dim)
    for layer in range(num_layers):
        d_in = input_dim if layer == 0 else hidden_dim
        key, k1, k2, k3, k4 = jax.random.split(key, 5)
        params["layers"].append({
            "w_ih": jax.random.uniform(k1, (4 * hidden_dim, d_in),
                                       jnp.float32, -k, k),
            "w_hh": jax.random.uniform(k2, (4 * hidden_dim, hidden_dim),
                                       jnp.float32, -k, k),
            "b_ih": jax.random.uniform(k3, (4 * hidden_dim,), jnp.float32, -k, k),
            "b_hh": jax.random.uniform(k4, (4 * hidden_dim,), jnp.float32, -k, k),
        })
    key, k5, k6 = jax.random.split(key, 3)
    params["fc_w"] = jax.random.uniform(k5, (output_dim, hidden_dim),
                                        jnp.float32, -k, k)
    params["fc_b"] = jax.random.uniform(k6, (output_dim,), jnp.float32, -k, k)
    return params


def prepare_params(raw, hidden_dim, output_dim):
    """Reorder gates to (i,f,o,g), transpose, tight-pad the 4H gate block to a
    128-lane multiple, and cast matmul weights to bf16 (biases stay f32)."""
    H = hidden_dim
    G4 = _round_up(4 * H, 128)
    Op = _round_up(output_dim, 128)

    def reorder_t(w):                                   # (4H, Din) -> (Din, 4H)
        w4 = w.reshape(4, H, -1)[_GATE_ORDER]
        return w4.reshape(4 * H, -1).T

    prep = {"layers": []}
    for lyr in raw["layers"]:
        wih_t = jnp.pad(reorder_t(lyr["w_ih"]), ((0, 0), (0, G4 - 4 * H)))
        whh_t = jnp.pad(reorder_t(lyr["w_hh"]), ((0, 0), (0, G4 - 4 * H)))
        bias = (lyr["b_ih"] + lyr["b_hh"]).reshape(4, H)[_GATE_ORDER]
        bias = jnp.pad(bias.reshape(1, 4 * H), ((0, 0), (0, G4 - 4 * H)))
        prep["layers"].append({
            "wih_t": wih_t.astype(jnp.bfloat16),
            "whh_t": whh_t.astype(jnp.bfloat16),
            "bias": bias.astype(jnp.float32),
        })
    prep["fc_w_t"] = jnp.pad(raw["fc_w"].T,
                             ((0, 0), (0, Op - output_dim))).astype(jnp.bfloat16)
    prep["fc_b"] = jnp.pad(raw["fc_b"],
                           (0, Op - output_dim)).reshape(1, Op).astype(jnp.float32)
    return prep


# ----------------------------------------------------------------------------
# model wrapper (mirrors LSTM.forward)
# ----------------------------------------------------------------------------
def lstm_forward(prep, x, *, num_nodes, hidden_dim, num_layers,
                 output_dim, lookahead):
    """x: (batch, lookback, num_nodes, input_dim) -> (out, (h_n, c_n))."""
    batch, lookback, nn_, input_dim = x.shape
    assert nn_ == num_nodes
    assert lookahead <= lookback, "FC head reads the last `lookahead` steps"
    B = batch * num_nodes
    T = lookback
    LA = lookahead
    H = hidden_dim
    Bp = _round_up(max(B, 1), 8)
    # batch-block "parallel" grid axis: two blocks feed v7x's two TensorCores;
    # falls back to a single block when the padded batch is too small to split.
    NB = 2 if Bp % 16 == 0 else 1
    Bb = Bp // NB
    G4 = prep["layers"][0]["wih_t"].shape[1]
    Op = prep["fc_b"].shape[1]

    # (batch,T,nodes,D) -> time-major (T, B', D); B' order (batch, node)
    # matches PyTorch's permute/view.  Pad B' to a sublane multiple.
    seq = jnp.transpose(x, (1, 0, 2, 3)).reshape(T, B, input_dim)
    seq = jnp.pad(seq, ((0, 0), (0, Bp - B), (0, 0)))

    y_pad, h_n_pad, c_n_pad = fused_lstm_forward(
        seq, prep["layers"], prep["fc_w_t"], prep["fc_b"],
        T=T, Bp=Bp, Bb=Bb, LA=LA, num_layers=num_layers, H=H, G4=G4, Op=Op)

    # Replicate PyTorch's reshape/view chain exactly.
    y = y_pad[:, :B, :output_dim]                          # (LA, B', O)
    y = jnp.transpose(y, (1, 0, 2)).reshape(-1, output_dim)
    out = y.reshape(batch, lookahead, num_nodes, output_dim)
    h_n = h_n_pad[:, :B, :]
    c_n = c_n_pad[:, :B, :]
    return out, (h_n, c_n)


# ----------------------------------------------------------------------------
# pure-JAX reference (f32, raw PyTorch-layout weights)
# ----------------------------------------------------------------------------
def _ref_forward(raw, x, *, num_nodes, hidden_dim, num_layers,
                 output_dim, lookahead):
    batch, lookback, _, input_dim = x.shape
    B = batch * num_nodes
    inp = jnp.transpose(x, (1, 0, 2, 3)).reshape(lookback, B, input_dim)
    h_fin, c_fin = [], []
    for lyr in raw["layers"]:
        wih_t, whh_t = lyr["w_ih"].T, lyr["w_hh"].T
        b = lyr["b_ih"] + lyr["b_hh"]

        def step(carry, x_t, wih_t=wih_t, whh_t=whh_t, b=b):
            h, c = carry
            gates = x_t @ wih_t + h @ whh_t + b
            i, f, g, o = jnp.split(gates, 4, axis=-1)
            i = jax.nn.sigmoid(i); f = jax.nn.sigmoid(f)
            g = jnp.tanh(g); o = jax.nn.sigmoid(o)
            c = f * c + i * g
            h = o * jnp.tanh(c)
            return (h, c), h

        init = (jnp.zeros((B, hidden_dim), jnp.float32),
                jnp.zeros((B, hidden_dim), jnp.float32))
        (h_T, c_T), inp = jax.lax.scan(step, init, inp)
        h_fin.append(h_T); c_fin.append(c_T)
    out_bth = jnp.transpose(inp, (1, 0, 2))
    tail = out_bth[:, -lookahead:, :].reshape(-1, hidden_dim)
    y = tail @ raw["fc_w"].T + raw["fc_b"]
    return (y.reshape(batch, lookahead, num_nodes, output_dim),
            (jnp.stack(h_fin), jnp.stack(c_fin)))


# ----------------------------------------------------------------------------
if __name__ == "__main__":
    batch = 2
    lookback = 8
    num_nodes = 1
    input_dim = 4
    hidden_dim = 32
    num_layers = 2
    output_dim = 3
    lookahead = 2

    key = jax.random.PRNGKey(0)
    key, pkey, xkey = jax.random.split(key, 3)
    raw = init_params(pkey, input_dim, hidden_dim, num_layers, output_dim)
    prep = prepare_params(raw, hidden_dim, output_dim)

    x = jax.random.normal(xkey, (batch, lookback, num_nodes, input_dim),
                          dtype=jnp.float32)

    fwd = jax.jit(functools.partial(
        lstm_forward, num_nodes=num_nodes, hidden_dim=hidden_dim,
        num_layers=num_layers, output_dim=output_dim, lookahead=lookahead))

    out, (h_n, c_n) = fwd(prep, x)
    out = jax.block_until_ready(out)
    h_n = jax.block_until_ready(h_n)
    c_n = jax.block_until_ready(c_n)

    assert out.shape == (batch, lookahead, num_nodes, output_dim)
    assert h_n.shape == (num_layers, batch * num_nodes, hidden_dim)
    assert c_n.shape == (num_layers, batch * num_nodes, hidden_dim)

    # verify against the pure-f32 reference; tolerance loosened for the bf16
    # MXU operands (accumulation is still f32).
    ref_out, (ref_h, ref_c) = _ref_forward(
        raw, x, num_nodes=num_nodes, hidden_dim=hidden_dim,
        num_layers=num_layers, output_dim=output_dim, lookahead=lookahead)
    ref_out = jax.block_until_ready(ref_out)
    np.testing.assert_allclose(np.asarray(out), np.asarray(ref_out),
                               rtol=3e-2, atol=3e-2)
    np.testing.assert_allclose(np.asarray(h_n), np.asarray(ref_h),
                               rtol=3e-2, atol=3e-2)
    np.testing.assert_allclose(np.asarray(c_n), np.asarray(ref_c),
                               rtol=3e-2, atol=3e-2)

    print("KERNEL_OK")
</pallas_src>

<mosaic_0001>
module attributes {stable_mosaic.version = 11 : i64} {
  func.func @kernel(%arg0: i32, %arg1: memref<8x8x4xf32, #tpu.memory_space<vmem>>, %arg2: memref<4x128xbf16, #tpu.memory_space<vmem>>, %arg3: memref<32x128xbf16, #tpu.memory_space<vmem>>, %arg4: memref<1x128xf32, #tpu.memory_space<vmem>>, %arg5: memref<32x128xbf16, #tpu.memory_space<vmem>>, %arg6: memref<32x128xbf16, #tpu.memory_space<vmem>>, %arg7: memref<1x128xf32, #tpu.memory_space<vmem>>, %arg8: memref<32x128xbf16, #tpu.memory_space<vmem>>, %arg9: memref<1x128xf32, #tpu.memory_space<vmem>>, %arg10: memref<2x8x128xf32, #tpu.memory_space<vmem>>, %arg11: memref<2x8x32xf32, #tpu.memory_space<vmem>>, %arg12: memref<2x8x32xf32, #tpu.memory_space<vmem>>, %arg13: memref<64x128xf32, #tpu.memory_space<vmem>>, %arg14: memref<64x32xf32, #tpu.memory_space<vmem>>, %arg15: memref<64x32xf32, #tpu.memory_space<vmem>>) attributes {dimension_semantics = [#tpu.dimension_semantics<parallel>], iteration_bounds = array<i64: 1>, scalar_prefetch = 0 : i64, scratch_operands = 3 : i64, tpu.core_type = #tpu.core_type<tc>, window_params = [{transform_indices = @transform_0, window_bounds = array<i64: 8, 8, 4>}, {pipeline_mode = #tpu.pipeline_mode<synchronous>, transform_indices = @transform_1, window_bounds = array<i64: 4, 128>}, {pipeline_mode = #tpu.pipeline_mode<synchronous>, transform_indices = @transform_2, window_bounds = array<i64: 32, 128>}, {pipeline_mode = #tpu.pipeline_mode<synchronous>, transform_indices = @transform_3, window_bounds = array<i64: 1, 128>}, {pipeline_mode = #tpu.pipeline_mode<synchronous>, transform_indices = @transform_4, window_bounds = array<i64: 32, 128>}, {pipeline_mode = #tpu.pipeline_mode<synchronous>, transform_indices = @transform_5, window_bounds = array<i64: 32, 128>}, {pipeline_mode = #tpu.pipeline_mode<synchronous>, transform_indices = @transform_6, window_bounds = array<i64: 1, 128>}, {pipeline_mode = #tpu.pipeline_mode<synchronous>, transform_indices = @transform_7, window_bounds = array<i64: 32, 128>}, {pipeline_mode = #tpu.pipeline_mode<synchronous>, transform_indices = @transform_8, window_bounds = array<i64: 1, 128>}, {transform_indices = @transform_9, window_bounds = array<i64: 2, 8, 128>}, {transform_indices = @transform_10, window_bounds = array<i64: 2, 8, 32>}, {transform_indices = @transform_11, window_bounds = array<i64: 2, 8, 32>}]} {
    %c0 = arith.constant 0 : index
    %c0_0 = arith.constant 0 : index
    %c0_1 = arith.constant 0 : index
    %0 = vector.load %arg1[%c0, %c0_0, %c0_1] : memref<8x8x4xf32, #tpu.memory_space<vmem>>, vector<8x8x4xf32>
    %1 = vector.shape_cast %0 : vector<8x8x4xf32> to vector<64x4xf32>
    %2 = arith.truncf %1 : vector<64x4xf32> to vector<64x4xbf16>
    %c0_2 = arith.constant 0 : index
    %c0_3 = arith.constant 0 : index
    %3 = vector.load %arg2[%c0_2, %c0_3] : memref<4x128xbf16, #tpu.memory_space<vmem>>, vector<4x128xbf16>
    %cst = arith.constant dense<0.000000e+00> : vector<64x128xf32>
    %4 = tpu.matmul %2, %3, %cst {dimension_numbers = #tpu.dot_dimension_numbers<[1], [0], [0], [1], [0, 0, 1, 1], [], []>} : vector<64x4xbf16>, vector<4x128xbf16>, vector<64x128xf32> -> vector<64x128xf32>
    %c0_4 = arith.constant 0 : index
    %c0_5 = arith.constant 0 : index
    %5 = vector.load %arg4[%c0_4, %c0_5] : memref<1x128xf32, #tpu.memory_space<vmem>>, vector<1x128xf32>
    %6 = vector.broadcast %5 : vector<1x128xf32> to vector<64x128xf32>
    %7 = arith.addf %4, %6 : vector<64x128xf32>
    %c0_6 = arith.constant 0 : index
    %c0_7 = arith.constant 0 : index
    %8 = vector.load %arg13[%c0_6, %c0_7] : memref<64x128xf32, #tpu.memory_space<vmem>>, vector<64x128xf32>
    tpu.vector_store %arg13[%c0_6, %c0_7], %7 {strides = array<i32>} : memref<64x128xf32, #tpu.memory_space<vmem>>, vector<64x128xf32>,
    %c0_8 = arith.constant 0 : index
    %c0_9 = arith.constant 0 : index
    %9 = vector.load %arg3[%c0_8, %c0_9] : memref<32x128xbf16, #tpu.memory_space<vmem>>, vector<32x128xbf16>
    %cst_10 = arith.constant 0.000000e+00 : f32
    %10 = vector.broadcast %cst_10 : f32 to vector<8x32xf32>
    %c0_i32 = arith.constant 0 : i32
    %c8_i32 = arith.constant 8 : i32
    %11 = arith.muli %c0_i32, %c8_i32 : i32
    %12 = tpu.assume_multiple %11, 8 : i32
    %13 = arith.index_cast %12 : i32 to index
    %c0_11 = arith.constant 0 : index
    %14 = vector.load %arg13[%13, %c0_11] : memref<64x128xf32, #tpu.memory_space<vmem>>, vector<8x128xf32>
    %15 = arith.truncf %10 : vector<8x32xf32> to vector<8x32xbf16>
    %cst_12 = arith.constant dense<0.000000e+00> : vector<8x128xf32>
    %16 = tpu.matmul %15, %9, %cst_12 {dimension_numbers = #tpu.dot_dimension_numbers<[1], [0], [0], [1], [0, 0, 1, 1], [], []>} : vector<8x32xbf16>, vector<32x128xbf16>, vector<8x128xf32> -> vector<8x128xf32>
    %17 = arith.addf %14, %16 : vector<8x128xf32>
    %18 = vector.extract_strided_slice %17 {offsets = [0, 0], sizes = [8, 96], strides = [1, 1]} : vector<8x128xf32> to vector<8x96xf32>
    %19 = arith.negf %18 : vector<8x96xf32>
    %20 = math.exp %19 : vector<8x96xf32>
    %cst_13 = arith.constant 1.000000e+00 : f32
    %21 = vector.broadcast %cst_13 : f32 to vector<8x96xf32>
    %22 = arith.addf %21, %20 : vector<8x96xf32>
    %23 = arith.divf %21, %22 : vector<8x96xf32>
    %24 = vector.extract_strided_slice %17 {offsets = [0, 96], sizes = [8, 32], strides = [1, 1]} : vector<8x128xf32> to vector<8x32xf32>
    %25 = math.tanh %24 : vector<8x32xf32>
    %26 = vector.extract_strided_slice %23 {offsets = [0, 0], sizes = [8, 32], strides = [1, 1]} : vector<8x96xf32> to vector<8x32xf32>
    %27 = vector.extract_strided_slice %23 {offsets = [0, 32], sizes = [8, 32], strides = [1, 1]} : vector<8x96xf32> to vector<8x32xf32>
    %28 = vector.extract_strided_slice %23 {offsets = [0, 64], sizes = [8, 32], strides = [1, 1]} : vector<8x96xf32> to vector<8x32xf32>
    %29 = arith.mulf %27, %10 : vector<8x32xf32>
    %30 = arith.mulf %26, %25 : vector<8x32xf32>
    %31 = arith.addf %29, %30 : vector<8x32xf32>
    %32 = math.tanh %31 : vector<8x32xf32>
    %33 = arith.mulf %28, %32 : vector<8x32xf32>
    %34 = arith.index_cast %12 : i32 to index
    %c0_14 = arith.constant 0 : index
    %35 = vector.load %arg14[%34, %c0_14] : memref<64x32xf32, #tpu.memory_space<vmem>>, vector<8x32xf32>
    tpu.vector_store %arg14[%34, %c0_14], %33 {strides = array<i32>} : memref<64x32xf32, #tpu.memory_space<vmem>>, vector<8x32xf32>,
    %c1_i32 = arith.constant 1 : i32
    %c8_i32_15 = arith.constant 8 : i32
    %36 = arith.muli %c1_i32, %c8_i32_15 : i32
    %37 = tpu.assume_multiple %36, 8 : i32
    %38 = arith.index_cast %37 : i32 to index
    %c0_16 = arith.constant 0 : index
    %39 = vector.load %arg13[%38, %c0_16] : memref<64x128xf32, #tpu.memory_space<vmem>>, vector<8x128xf32>
    %40 = arith.truncf %33 : vector<8x32xf32> to vector<8x32xbf16>
    %cst_17 = arith.constant dense<0.000000e+00> : vector<8x128xf32>
    %41 = tpu.matmul %40, %9, %cst_17 {dimension_numbers = #tpu.dot_dimension_numbers<[1], [0], [0], [1], [0, 0, 1, 1], [], []>} : vector<8x32xbf16>, vector<32x128xbf16>, vector<8x128xf32> -> vector<8x128xf32>
    %42 = arith.addf %39, %41 : vector<8x128xf32>
    %43 = vector.extract_strided_slice %42 {offsets = [0, 0], sizes = [8, 96], strides = [1, 1]} : vector<8x128xf32> to vector<8x96xf32>
    %44 = arith.negf %43 : vector<8x96xf32>
    %45 = math.exp %44 : vector<8x96xf32>
    %cst_18 = arith.constant 1.000000e+00 : f32
    %46 = vector.broadcast %cst_18 : f32 to vector<8x96xf32>
    %47 = arith.addf %46, %45 : vector<8x96xf32>
    %48 = arith.divf %46, %47 : vector<8x96xf32>
    %49 = vector.extract_strided_slice %42 {offsets = [0, 96], sizes = [8, 32], strides = [1, 1]} : vector<8x128xf32> to vector<8x32xf32>
    %50 = math.tanh %49 : vector<8x32xf32>
    %51 = vector.extract_strided_slice %48 {offsets = [0, 0], sizes = [8, 32], strides = [1, 1]} : vector<8x96xf32> to vector<8x32xf32>
    %52 = vector.extract_strided_slice %48 {offsets = [0, 32], sizes = [8, 32], strides = [1, 1]} : vector<8x96xf32> to vector<8x32xf32>
    %53 = vector.extract_strided_slice %48 {offsets = [0, 64], sizes = [8, 32], strides = [1, 1]} : vector<8x96xf32> to vector<8x32xf32>
    %54 = arith.mulf %52, %31 : vector<8x32xf32>
    %55 = arith.mulf %51, %50 : vector<8x32xf32>
    %56 = arith.addf %54, %55 : vector<8x32xf32>
    %57 = math.tanh %56 : vector<8x32xf32>
    %58 = arith.mulf %53, %57 : vector<8x32xf32>
    %59 = arith.index_cast %37 : i32 to index
    %c0_19 = arith.constant 0 : index
    %60 = vector.load %arg14[%59, %c0_19] : memref<64x32xf32, #tpu.memory_space<vmem>>, vector<8x32xf32>
    tpu.vector_store %arg14[%59, %c0_19], %58 {strides = array<i32>} : memref<64x32xf32, #tpu.memory_space<vmem>>, vector<8x32xf32>,
    %c2_i32 = arith.constant 2 : i32
    %c8_i32_20 = arith.constant 8 : i32
    %61 = arith.muli %c2_i32, %c8_i32_20 : i32
    %62 = tpu.assume_multiple %61, 8 : i32
    %63 = arith.index_cast %62 : i32 to index
    %c0_21 = arith.constant 0 : index
    %64 = vector.load %arg13[%63, %c0_21] : memref<64x128xf32, #tpu.memory_space<vmem>>, vector<8x128xf32>
    %65 = arith.truncf %58 : vector<8x32xf32> to vector<8x32xbf16>
    %cst_22 = arith.constant dense<0.000000e+00> : vector<8x128xf32>
    %66 = tpu.matmul %65, %9, %cst_22 {dimension_numbers = #tpu.dot_dimension_numbers<[1], [0], [0], [1], [0, 0, 1, 1], [], []>} : vector<8x32xbf16>, vector<32x128xbf16>, vector<8x128xf32> -> vector<8x128xf32>
    %67 = arith.addf %64, %66 : vector<8x128xf32>
    %68 = vector.extract_strided_slice %67 {offsets = [0, 0], sizes = [8, 96], strides = [1, 1]} : vector<8x128xf32> to vector<8x96xf32>
    %69 = arith.negf %68 : vector<8x96xf32>
    %70 = math.exp %69 : vector<8x96xf32>
    %cst_23 = arith.constant 1.000000e+00 : f32
    %71 = vector.broadcast %cst_23 : f32 to vector<8x96xf32>
    %72 = arith.addf %71, %70 : vector<8x96xf32>
    %73 = arith.divf %71, %72 : vector<8x96xf32>
    %74 = vector.extract_strided_slice %67 {offsets = [0, 96], sizes = [8, 32], strides = [1, 1]} : vector<8x128xf32> to vector<8x32xf32>
    %75 = math.tanh %74 : vector<8x32xf32>
    %76 = vector.extract_strided_slice %73 {offsets = [0, 0], sizes = [8, 32], strides = [1, 1]} : vector<8x96xf32> to vector<8x32xf32>
    %77 = vector.extract_strided_slice %73 {offsets = [0, 32], sizes = [8, 32], strides = [1, 1]} : vector<8x96xf32> to vector<8x32xf32>
    %78 = vector.extract_strided_slice %73 {offsets = [0, 64], sizes = [8, 32], strides = [1, 1]} : vector<8x96xf32> to vector<8x32xf32>
    %79 = arith.mulf %77, %56 : vector<8x32xf32>
    %80 = arith.mulf %76, %75 : vector<8x32xf32>
    %81 = arith.addf %79, %80 : vector<8x32xf32>
    %82 = math.tanh %81 : vector<8x32xf32>
    %83 = arith.mulf %78, %82 : vector<8x32xf32>
    %84 = arith.index_cast %62 : i32 to index
    %c0_24 = arith.constant 0 : index
    %85 = vector.load %arg14[%84, %c0_24] : memref<64x32xf32, #tpu.memory_space<vmem>>, vector<8x32xf32>
    tpu.vector_store %arg14[%84, %c0_24], %83 {strides = array<i32>} : memref<64x32xf32, #tpu.memory_space<vmem>>, vector<8x32xf32>,
    %c3_i32 = arith.constant 3 : i32
    %c8_i32_25 = arith.constant 8 : i32
    %86 = arith.muli %c3_i32, %c8_i32_25 : i32
    %87 = tpu.assume_multiple %86, 8 : i32
    %88 = arith.index_cast %87 : i32 to index
    %c0_26 = arith.constant 0 : index
    %89 = vector.load %arg13[%88, %c0_26] : memref<64x128xf32, #tpu.memory_space<vmem>>, vector<8x128xf32>
    %90 = arith.truncf %83 : vector<8x32xf32> to vector<8x32xbf16>
    %cst_27 = arith.constant dense<0.000000e+00> : vector<8x128xf32>
    %91 = tpu.matmul %90, %9, %cst_27 {dimension_numbers = #tpu.dot_dimension_numbers<[1], [0], [0], [1], [0, 0, 1, 1], [], []>} : vector<8x32xbf16>, vector<32x128xbf16>, vector<8x128xf32> -> vector<8x128xf32>
    %92 = arith.addf %89, %91 : vector<8x128xf32>
    %93 = vector.extract_strided_slice %92 {offsets = [0, 0], sizes = [8, 96], strides = [1, 1]} : vector<8x128xf32> to vector<8x96xf32>
    %94 = arith.negf %93 : vector<8x96xf32>
    %95 = math.exp %94 : vector<8x96xf32>
    %cst_28 = arith.constant 1.000000e+00 : f32
    %96 = vector.broadcast %cst_28 : f32 to vector<8x96xf32>
    %97 = arith.addf %96, %95 : vector<8x96xf32>
    %98 = arith.divf %96, %97 : vector<8x96xf32>
    %99 = vector.extract_strided_slice %92 {offsets = [0, 96], sizes = [8, 32], strides = [1, 1]} : vector<8x128xf32> to vector<8x32xf32>
    %100 = math.tanh %99 : vector<8x32xf32>
    %101 = vector.extract_strided_slice %98 {offsets = [0, 0], sizes = [8, 32], strides = [1, 1]} : vector<8x96xf32> to vector<8x32xf32>
    %102 = vector.extract_strided_slice %98 {offsets = [0, 32], sizes = [8, 32], strides = [1, 1]} : vector<8x96xf32> to vector<8x32xf32>
    %103 = vector.extract_strided_slice %98 {offsets = [0, 64], sizes = [8, 32], strides = [1, 1]} : vector<8x96xf32> to vector<8x32xf32>
    %104 = arith.mulf %102, %81 : vector<8x32xf32>
    %105 = arith.mulf %101, %100 : vector<8x32xf32>
    %106 = arith.addf %104, %105 : vector<8x32xf32>
    %107 = math.tanh %106 : vector<8x32xf32>
    %108 = arith.mulf %103, %107 : vector<8x32xf32>
    %109 = arith.index_cast %87 : i32 to index
    %c0_29 = arith.constant 0 : index
    %110 = vector.load %arg14[%109, %c0_29] : memref<64x32xf32, #tpu.memory_space<vmem>>, vector<8x32xf32>
    tpu.vector_store %arg14[%109, %c0_29], %108 {strides = array<i32>} : memref<64x32xf32, #tpu.memory_space<vmem>>, vector<8x32xf32>,
    %c4_i32 = arith.constant 4 : i32
    %c8_i32_30 = arith.constant 8 : i32
    %111 = arith.muli %c4_i32, %c8_i32_30 : i32
    %112 = tpu.assume_multiple %111, 8 : i32
    %113 = arith.index_cast %112 : i32 to index
    %c0_31 = arith.constant 0 : index
    %114 = vector.load %arg13[%113, %c0_31] : memref<64x128xf32, #tpu.memory_space<vmem>>, vector<8x128xf32>
    %115 = arith.truncf %108 : vector<8x32xf32> to vector<8x32xbf16>
    %cst_32 = arith.constant dense<0.000000e+00> : vector<8x128xf32>
    %116 = tpu.matmul %115, %9, %cst_32 {dimension_numbers = #tpu.dot_dimension_numbers<[1], [0], [0], [1], [0, 0, 1, 1], [], []>} : vector<8x32xbf16>, vector<32x128xbf16>, vector<8x128xf32> -> vector<8x128xf32>
    %117 = arith.addf %114, %116 : vector<8x128xf32>
    %118 = vector.extract_strided_slice %117 {offsets = [0, 0], sizes = [8, 96], strides = [1, 1]} : vector<8x128xf32> to vector<8x96xf32>
    %119 = arith.negf %118 : vector<8x96xf32>
    %120 = math.exp %119 : vector<8x96xf32>
    %cst_33 = arith.constant 1.000000e+00 : f32
    %121 = vector.broadcast %cst_33 : f32 to vector<8x96xf32>
    %122 = arith.addf %121, %120 : vector<8x96xf32>
    %123 = arith.divf %121, %122 : vector<8x96xf32>
    %124 = vector.extract_strided_slice %117 {offsets = [0, 96], sizes = [8, 32], strides = [1, 1]} : vector<8x128xf32> to vector<8x32xf32>
    %125 = math.tanh %124 : vector<8x32xf32>
    %126 = vector.extract_strided_slice %123 {offsets = [0, 0], sizes = [8, 32], strides = [1, 1]} : vector<8x96xf32> to vector<8x32xf32>
    %127 = vector.extract_strided_slice %123 {offsets = [0, 32], sizes = [8, 32], strides = [1, 1]} : vector<8x96xf32> to vector<8x32xf32>
    %128 = vector.extract_strided_slice %123 {offsets = [0, 64], sizes = [8, 32], strides = [1, 1]} : vector<8x96xf32> to vector<8x32xf32>
    %129 = arith.mulf %127, %106 : vector<8x32xf32>
    %130 = arith.mulf %126, %125 : vector<8x32xf32>
    %131 = arith.addf %129, %130 : vector<8x32xf32>
    %132 = math.tanh %131 : vector<8x32xf32>
    %133 = arith.mulf %128, %132 : vector<8x32xf32>
    %134 = arith.index_cast %112 : i32 to index
    %c0_34 = arith.constant 0 : index
    %135 = vector.load %arg14[%134, %c0_34] : memref<64x32xf32, #tpu.memory_space<vmem>>, vector<8x32xf32>
    tpu.vector_store %arg14[%134, %c0_34], %133 {strides = array<i32>} : memref<64x32xf32, #tpu.memory_space<vmem>>, vector<8x32xf32>,
    %c5_i32 = arith.constant 5 : i32
    %c8_i32_35 = arith.constant 8 : i32
    %136 = arith.muli %c5_i32, %c8_i32_35 : i32
    %137 = tpu.assume_multiple %136, 8 : i32
    %138 = arith.index_cast %137 : i32 to index
    %c0_36 = arith.constant 0 : index
    %139 = vector.load %arg13[%138, %c0_36] : memref<64x128xf32, #tpu.memory_space<vmem>>, vector<8x128xf32>
    %140 = arith.truncf %133 : vector<8x32xf32> to vector<8x32xbf16>
    %cst_37 = arith.constant dense<0.000000e+00> : vector<8x128xf32>
    %141 = tpu.matmul %140, %9, %cst_37 {dimension_numbers = #tpu.dot_dimension_numbers<[1], [0], [0], [1], [0, 0, 1, 1], [], []>} : vector<8x32xbf16>, vector<32x128xbf16>, vector<8x128xf32> -> vector<8x128xf32>
    %142 = arith.addf %139, %141 : vector<8x128xf32>
    %143 = vector.extract_strided_slice %142 {offsets = [0, 0], sizes = [8, 96], strides = [1, 1]} : vector<8x128xf32> to vector<8x96xf32>
    %144 = arith.negf %143 : vector<8x96xf32>
    %145 = math.exp %144 : vector<8x96xf32>
    %cst_38 = arith.constant 1.000000e+00 : f32
    %146 = vector.broadcast %cst_38 : f32 to vector<8x96xf32>
    %147 = arith.addf %146, %145 : vector<8x96xf32>
    %148 = arith.divf %146, %147 : vector<8x96xf32>
    %149 = vector.extract_strided_slice %142 {offsets = [0, 96], sizes = [8, 32], strides = [1, 1]} : vector<8x128xf32> to vector<8x32xf32>
    %150 = math.tanh %149 : vector<8x32xf32>
    %151 = vector.extract_strided_slice %148 {offsets = [0, 0], sizes = [8, 32], strides = [1, 1]} : vector<8x96xf32> to vector<8x32xf32>
    %152 = vector.extract_strided_slice %148 {offsets = [0, 32], sizes = [8, 32], strides = [1, 1]} : vector<8x96xf32> to vector<8x32xf32>
    %153 = vector.extract_strided_slice %148 {offsets = [0, 64], sizes = [8, 32], strides = [1, 1]} : vector<8x96xf32> to vector<8x32xf32>
    %154 = arith.mulf %152, %131 : vector<8x32xf32>
    %155 = arith.mulf %151, %150 : vector<8x32xf32>
    %156 = arith.addf %154, %155 : vector<8x32xf32>
    %157 = math.tanh %156 : vector<8x32xf32>
    %158 = arith.mulf %153, %157 : vector<8x32xf32>
    %159 = arith.index_cast %137 : i32 to index
    %c0_39 = arith.constant 0 : index
    %160 = vector.load %arg14[%159, %c0_39] : memref<64x32xf32, #tpu.memory_space<vmem>>, vector<8x32xf32>
    tpu.vector_store %arg14[%159, %c0_39], %158 {strides = array<i32>} : memref<64x32xf32, #tpu.memory_space<vmem>>, vector<8x32xf32>,
    %c6_i32 = arith.constant 6 : i32
    %c8_i32_40 = arith.constant 8 : i32
    %161 = arith.muli %c6_i32, %c8_i32_40 : i32
    %162 = tpu.assume_multiple %161, 8 : i32
    %163 = arith.index_cast %162 : i32 to index
    %c0_41 = arith.constant 0 : index
    %164 = vector.load %arg13[%163, %c0_41] : memref<64x128xf32, #tpu.memory_space<vmem>>, vector<8x128xf32>
    %165 = arith.truncf %158 : vector<8x32xf32> to vector<8x32xbf16>
    %cst_42 = arith.constant dense<0.000000e+00> : vector<8x128xf32>
    %166 = tpu.matmul %165, %9, %cst_42 {dimension_numbers = #tpu.dot_dimension_numbers<[1], [0], [0], [1], [0, 0, 1, 1], [], []>} : vector<8x32xbf16>, vector<32x128xbf16>, vector<8x128xf32> -> vector<8x128xf32>
    %167 = arith.addf %164, %166 : vector<8x128xf32>
    %168 = vector.extract_strided_slice %167 {offsets = [0, 0], sizes = [8, 96], strides = [1, 1]} : vector<8x128xf32> to vector<8x96xf32>
    %169 = arith.negf %168 : vector<8x96xf32>
    %170 = math.exp %169 : vector<8x96xf32>
    %cst_43 = arith.constant 1.000000e+00 : f32
    %171 = vector.broadcast %cst_43 : f32 to vector<8x96xf32>
    %172 = arith.addf %171, %170 : vector<8x96xf32>
    %173 = arith.divf %171, %172 : vector<8x96xf32>
    %174 = vector.extract_strided_slice %167 {offsets = [0, 96], sizes = [8, 32], strides = [1, 1]} : vector<8x128xf32> to vector<8x32xf32>
    %175 = math.tanh %174 : vector<8x32xf32>
    %176 = vector.extract_strided_slice %173 {offsets = [0, 0], sizes = [8, 32], strides = [1, 1]} : vector<8x96xf32> to vector<8x32xf32>
    %177 = vector.extract_strided_slice %173 {offsets = [0, 32], sizes = [8, 32], strides = [1, 1]} : vector<8x96xf32> to vector<8x32xf32>
    %178 = vector.extract_strided_slice %173 {offsets = [0, 64], sizes = [8, 32], strides = [1, 1]} : vector<8x96xf32> to vector<8x32xf32>
    %179 = arith.mulf %177, %156 : vector<8x32xf32>
    %180 = arith.mulf %176, %175 : vector<8x32xf32>
    %181 = arith.addf %179, %180 : vector<8x32xf32>
    %182 = math.tanh %181 : vector<8x32xf32>
    %183 = arith.mulf %178, %182 : vector<8x32xf32>
    %184 = arith.index_cast %162 : i32 to index
    %c0_44 = arith.constant 0 : index
    %185 = vector.load %arg14[%184, %c0_44] : memref<64x32xf32, #tpu.memory_space<vmem>>, vector<8x32xf32>
    tpu.vector_store %arg14[%184, %c0_44], %183 {strides = array<i32>} : memref<64x32xf32, #tpu.memory_space<vmem>>, vector<8x32xf32>,
    %c7_i32 = arith.constant 7 : i32
    %c8_i32_45 = arith.constant 8 : i32
    %186 = arith.muli %c7_i32, %c8_i32_45 : i32
    %187 = tpu.assume_multiple %186, 8 : i32
    %188 = arith.index_cast %187 : i32 to index
    %c0_46 = arith.constant 0 : index
    %189 = vector.load %arg13[%188, %c0_46] : memref<64x128xf32, #tpu.memory_space<vmem>>, vector<8x128xf32>
    %190 = arith.truncf %183 : vector<8x32xf32> to vector<8x32xbf16>
    %cst_47 = arith.constant dense<0.000000e+00> : vector<8x128xf32>
    %191 = tpu.matmul %190, %9, %cst_47 {dimension_numbers = #tpu.dot_dimension_numbers<[1], [0], [0], [1], [0, 0, 1, 1], [], []>} : vector<8x32xbf16>, vector<32x128xbf16>, vector<8x128xf32> -> vector<8x128xf32>
    %192 = arith.addf %189, %191 : vector<8x128xf32>
    %193 = vector.extract_strided_slice %192 {offsets = [0, 0], sizes = [8, 96], strides = [1, 1]} : vector<8x128xf32> to vector<8x96xf32>
    %194 = arith.negf %193 : vector<8x96xf32>
    %195 = math.exp %194 : vector<8x96xf32>
    %cst_48 = arith.constant 1.000000e+00 : f32
    %196 = vector.broadcast %cst_48 : f32 to vector<8x96xf32>
    %197 = arith.addf %196, %195 : vector<8x96xf32>
    %198 = arith.divf %196, %197 : vector<8x96xf32>
    %199 = vector.extract_strided_slice %192 {offsets = [0, 96], sizes = [8, 32], strides = [1, 1]} : vector<8x128xf32> to vector<8x32xf32>
    %200 = math.tanh %199 : vector<8x32xf32>
    %201 = vector.extract_strided_slice %198 {offsets = [0, 0], sizes = [8, 32], strides = [1, 1]} : vector<8x96xf32> to vector<8x32xf32>
    %202 = vector.extract_strided_slice %198 {offsets = [0, 32], sizes = [8, 32], strides = [1, 1]} : vector<8x96xf32> to vector<8x32xf32>
    %203 = vector.extract_strided_slice %198 {offsets = [0, 64], sizes = [8, 32], strides = [1, 1]} : vector<8x96xf32> to vector<8x32xf32>
    %204 = arith.mulf %202, %181 : vector<8x32xf32>
    %205 = arith.mulf %201, %200 : vector<8x32xf32>
    %206 = arith.addf %204, %205 : vector<8x32xf32>
    %207 = math.tanh %206 : vector<8x32xf32>
    %208 = arith.mulf %203, %207 : vector<8x32xf32>
    %209 = arith.index_cast %187 : i32 to index
    %c0_49 = arith.constant 0 : index
    %210 = vector.load %arg14[%209, %c0_49] : memref<64x32xf32, #tpu.memory_space<vmem>>, vector<8x32xf32>
    tpu.vector_store %arg14[%209, %c0_49], %208 {strides = array<i32>} : memref<64x32xf32, #tpu.memory_space<vmem>>, vector<8x32xf32>,
    %c8_i32_50 = arith.constant 8 : i32
    %c0_51 = arith.constant 0 : index
    %c0_52 = arith.constant 0 : index
    %c0_53 = arith.constant 0 : index
    %211 = vector.load %arg11[%c0_51, %c0_52, %c0_53] : memref<2x8x32xf32, #tpu.memory_space<vmem>>, vector<1x8x32xf32>
    %212 = vector.shape_cast %211 : vector<1x8x32xf32> to vector<8x32xf32>
    %213 = vector.shape_cast %208 : vector<8x32xf32> to vector<1x8x32xf32>
    tpu.vector_store %arg11[%c0_51, %c0_52, %c0_53], %213 {strides = array<i32>} : memref<2x8x32xf32, #tpu.memory_space<vmem>>, vector<1x8x32xf32>,
    %c0_54 = arith.constant 0 : index
    %c0_55 = arith.constant 0 : index
    %c0_56 = arith.constant 0 : index
    %214 = vector.load %arg12[%c0_54, %c0_55, %c0_56] : memref<2x8x32xf32, #tpu.memory_space<vmem>>, vector<1x8x32xf32>
    %215 = vector.shape_cast %214 : vector<1x8x32xf32> to vector<8x32xf32>
    %216 = vector.shape_cast %206 : vector<8x32xf32> to vector<1x8x32xf32>
    tpu.vector_store %arg12[%c0_54, %c0_55, %c0_56], %216 {strides = array<i32>} : memref<2x8x32xf32, #tpu.memory_space<vmem>>, vector<1x8x32xf32>,
    %c0_57 = arith.constant 0 : index
    %c0_58 = arith.constant 0 : index
    %217 = vector.load %arg14[%c0_57, %c0_58] : memref<64x32xf32, #tpu.memory_space<vmem>>, vector<64x32xf32>
    %218 = arith.truncf %217 : vector<64x32xf32> to vector<64x32xbf16>
    %c0_59 = arith.constant 0 : index
    %c0_60 = arith.constant 0 : index
    %219 = vector.load %arg5[%c0_59, %c0_60] : memref<32x128xbf16, #tpu.memory_space<vmem>>, vector<32x128xbf16>
    %cst_61 = arith.constant dense<0.000000e+00> : vector<64x128xf32>
    %220 = tpu.matmul %218, %219, %cst_61 {dimension_numbers = #tpu.dot_dimension_numbers<[1], [0], [0], [1], [0, 0, 1, 1], [], []>} : vector<64x32xbf16>, vector<32x128xbf16>, vector<64x128xf32> -> vector<64x128xf32>
    %c0_62 = arith.constant 0 : index
    %c0_63 = arith.constant 0 : index
    %221 = vector.load %arg7[%c0_62, %c0_63] : memref<1x128xf32, #tpu.memory_space<vmem>>, vector<1x128xf32>
    %222 = vector.broadcast %221 : vector<1x128xf32> to vector<64x128xf32>
    %223 = arith.addf %220, %222 : vector<64x128xf32>
    %c0_64 = arith.constant 0 : index
    %c0_65 = arith.constant 0 : index
    %224 = vector.load %arg13[%c0_64, %c0_65] : memref<64x128xf32, #tpu.memory_space<vmem>>, vector<64x128xf32>
    tpu.vector_store %arg13[%c0_64, %c0_65], %223 {strides = array<i32>} : memref<64x128xf32, #tpu.memory_space<vmem>>, vector<64x128xf32>,
    %c0_66 = arith.constant 0 : index
    %c0_67 = arith.constant 0 : index
    %225 = vector.load %arg6[%c0_66, %c0_67] : memref<32x128xbf16, #tpu.memory_space<vmem>>, vector<32x128xbf16>
    %cst_68 = arith.constant 0.000000e+00 : f32
    %226 = vector.broadcast %cst_68 : f32 to vector<8x32xf32>
    %c0_i32_69 = arith.constant 0 : i32
    %c8_i32_70 = arith.constant 8 : i32
    %227 = arith.muli %c0_i32_69, %c8_i32_70 : i32
    %228 = tpu.assume_multiple %227, 8 : i32
    %229 = arith.index_cast %228 : i32 to index
    %c0_71 = arith.constant 0 : index
    %230 = vector.load %arg13[%229, %c0_71] : memref<64x128xf32, #tpu.memory_space<vmem>>, vector<8x128xf32>
    %231 = arith.truncf %226 : vector<8x32xf32> to vector<8x32xbf16>
    %cst_72 = arith.constant dense<0.000000e+00> : vector<8x128xf32>
    %232 = tpu.matmul %231, %225, %cst_72 {dimension_numbers = #tpu.dot_dimension_numbers<[1], [0], [0], [1], [0, 0, 1, 1], [], []>} : vector<8x32xbf16>, vector<32x128xbf16>, vector<8x128xf32> -> vector<8x128xf32>
    %233 = arith.addf %230, %232 : vector<8x128xf32>
    %234 = vector.extract_strided_slice %233 {offsets = [0, 0], sizes = [8, 96], strides = [1, 1]} : vector<8x128xf32> to vector<8x96xf32>
    %235 = arith.negf %234 : vector<8x96xf32>
    %236 = math.exp %235 : vector<8x96xf32>
    %cst_73 = arith.constant 1.000000e+00 : f32
    %237 = vector.broadcast %cst_73 : f32 to vector<8x96xf32>
    %238 = arith.addf %237, %236 : vector<8x96xf32>
    %239 = arith.divf %237, %238 : vector<8x96xf32>
    %240 = vector.extract_strided_slice %233 {offsets = [0, 96], sizes = [8, 32], strides = [1, 1]} : vector<8x128xf32> to vector<8x32xf32>
    %241 = math.tanh %240 : vector<8x32xf32>
    %242 = vector.extract_strided_slice %239 {offsets = [0, 0], sizes = [8, 32], strides = [1, 1]} : vector<8x96xf32> to vector<8x32xf32>
    %243 = vector.extract_strided_slice %239 {offsets = [0, 32], sizes = [8, 32], strides = [1, 1]} : vector<8x96xf32> to vector<8x32xf32>
    %244 = vector.extract_strided_slice %239 {offsets = [0, 64], sizes = [8, 32], strides = [1, 1]} : vector<8x96xf32> to vector<8x32xf32>
    %245 = arith.mulf %243, %226 : vector<8x32xf32>
    %246 = arith.mulf %242, %241 : vector<8x32xf32>
    %247 = arith.addf %245, %246 : vector<8x32xf32>
    %248 = math.tanh %247 : vector<8x32xf32>
    %249 = arith.mulf %244, %248 : vector<8x32xf32>
    %250 = arith.index_cast %228 : i32 to index
    %c0_74 = arith.constant 0 : index
    %251 = vector.load %arg15[%250, %c0_74] : memref<64x32xf32, #tpu.memory_space<vmem>>, vector<8x32xf32>
    tpu.vector_store %arg15[%250, %c0_74], %249 {strides = array<i32>} : memref<64x32xf32, #tpu.memory_space<vmem>>, vector<8x32xf32>,
    %c1_i32_75 = arith.constant 1 : i32
    %c8_i32_76 = arith.constant 8 : i32
    %252 = arith.muli %c1_i32_75, %c8_i32_76 : i32
    %253 = tpu.assume_multiple %252, 8 : i32
    %254 = arith.index_cast %253 : i32 to index
    %c0_77 = arith.constant 0 : index
    %255 = vector.load %arg13[%254, %c0_77] : memref<64x128xf32, #tpu.memory_space<vmem>>, vector<8x128xf32>
    %256 = arith.truncf %249 : vector<8x32xf32> to vector<8x32xbf16>
    %cst_78 = arith.constant dense<0.000000e+00> : vector<8x128xf32>
    %257 = tpu.matmul %256, %225, %cst_78 {dimension_numbers = #tpu.dot_dimension_numbers<[1], [0], [0], [1], [0, 0, 1, 1], [], []>} : vector<8x32xbf16>, vector<32x128xbf16>, vector<8x128xf32> -> vector<8x128xf32>
    %258 = arith.addf %255, %257 : vector<8x128xf32>
    %259 = vector.extract_strided_slice %258 {offsets = [0, 0], sizes = [8, 96], strides = [1, 1]} : vector<8x128xf32> to vector<8x96xf32>
    %260 = arith.negf %259 : vector<8x96xf32>
    %261 = math.exp %260 : vector<8x96xf32>
    %cst_79 = arith.constant 1.000000e+00 : f32
    %262 = vector.broadcast %cst_79 : f32 to vector<8x96xf32>
    %263 = arith.addf %262, %261 : vector<8x96xf32>
    %264 = arith.divf %262, %263 : vector<8x96xf32>
    %265 = vector.extract_strided_slice %258 {offsets = [0, 96], sizes = [8, 32], strides = [1, 1]} : vector<8x128xf32> to vector<8x32xf32>
    %266 = math.tanh %265 : vector<8x32xf32>
    %267 = vector.extract_strided_slice %264 {offsets = [0, 0], sizes = [8, 32], strides = [1, 1]} : vector<8x96xf32> to vector<8x32xf32>
    %268 = vector.extract_strided_slice %264 {offsets = [0, 32], sizes = [8, 32], strides = [1, 1]} : vector<8x96xf32> to vector<8x32xf32>
    %269 = vector.extract_strided_slice %264 {offsets = [0, 64], sizes = [8, 32], strides = [1, 1]} : vector<8x96xf32> to vector<8x32xf32>
    %270 = arith.mulf %268, %247 : vector<8x32xf32>
    %271 = arith.mulf %267, %266 : vector<8x32xf32>
    %272 = arith.addf %270, %271 : vector<8x32xf32>
    %273 = math.tanh %272 : vector<8x32xf32>
    %274 = arith.mulf %269, %273 : vector<8x32xf32>
    %275 = arith.index_cast %253 : i32 to index
    %c0_80 = arith.constant 0 : index
    %276 = vector.load %arg15[%275, %c0_80] : memref<64x32xf32, #tpu.memory_space<vmem>>, vector<8x32xf32>
    tpu.vector_store %arg15[%275, %c0_80], %274 {strides = array<i32>} : memref<64x32xf32, #tpu.memory_space<vmem>>, vector<8x32xf32>,
    %c2_i32_81 = arith.constant 2 : i32
    %c8_i32_82 = arith.constant 8 : i32
    %277 = arith.muli %c2_i32_81, %c8_i32_82 : i32
    %278 = tpu.assume_multiple %277, 8 : i32
    %279 = arith.index_cast %278 : i32 to index
    %c0_83 = arith.constant 0 : index
    %280 = vector.load %arg13[%279, %c0_83] : memref<64x128xf32, #tpu.memory_space<vmem>>, vector<8x128xf32>
    %281 = arith.truncf %274 : vector<8x32xf32> to vector<8x32xbf16>
    %cst_84 = arith.constant dense<0.000000e+00> : vector<8x128xf32>
    %282 = tpu.matmul %281, %225, %cst_84 {dimension_numbers = #tpu.dot_dimension_numbers<[1], [0], [0], [1], [0, 0, 1, 1], [], []>} : vector<8x32xbf16>, vector<32x128xbf16>, vector<8x128xf32> -> vector<8x128xf32>
    %283 = arith.addf %280, %282 : vector<8x128xf32>
    %284 = vector.extract_strided_slice %283 {offsets = [0, 0], sizes = [8, 96], strides = [1, 1]} : vector<8x128xf32> to vector<8x96xf32>
    %285 = arith.negf %284 : vector<8x96xf32>
    %286 = math.exp %285 : vector<8x96xf32>
    %cst_85 = arith.constant 1.000000e+00 : f32
    %287 = vector.broadcast %cst_85 : f32 to vector<8x96xf32>
    %288 = arith.addf %287, %286 : vector<8x96xf32>
    %289 = arith.divf %287, %288 : vector<8x96xf32>
    %290 = vector.extract_strided_slice %283 {offsets = [0, 96], sizes = [8, 32], strides = [1, 1]} : vector<8x128xf32> to vector<8x32xf32>
    %291 = math.tanh %290 : vector<8x32xf32>
    %292 = vector.extract_strided_slice %289 {offsets = [0, 0], sizes = [8, 32], strides = [1, 1]} : vector<8x96xf32> to vector<8x32xf32>
    %293 = vector.extract_strided_slice %289 {offsets = [0, 32], sizes = [8, 32], strides = [1, 1]} : vector<8x96xf32> to vector<8x32xf32>
    %294 = vector.extract_strided_slice %289 {offsets = [0, 64], sizes = [8, 32], strides = [1, 1]} : vector<8x96xf32> to vector<8x32xf32>
    %295 = arith.mulf %293, %272 : vector<8x32xf32>
    %296 = arith.mulf %292, %291 : vector<8x32xf32>
    %297 = arith.addf %295, %296 : vector<8x32xf32>
    %298 = math.tanh %297 : vector<8x32xf32>
    %299 = arith.mulf %294, %298 : vector<8x32xf32>
    %300 = arith.index_cast %278 : i32 to index
    %c0_86 = arith.constant 0 : index
    %301 = vector.load %arg15[%300, %c0_86] : memref<64x32xf32, #tpu.memory_space<vmem>>, vector<8x32xf32>
    tpu.vector_store %arg15[%300, %c0_86], %299 {strides = array<i32>} : memref<64x32xf32, #tpu.memory_space<vmem>>, vector<8x32xf32>,
    %c3_i32_87 = arith.constant 3 : i32
    %c8_i32_88 = arith.constant 8 : i32
    %302 = arith.muli %c3_i32_87, %c8_i32_88 : i32
    %303 = tpu.assume_multiple %302, 8 : i32
    %304 = arith.index_cast %303 : i32 to index
    %c0_89 = arith.constant 0 : index
    %305 = vector.load %arg13[%304, %c0_89] : memref<64x128xf32, #tpu.memory_space<vmem>>, vector<8x128xf32>
    %306 = arith.truncf %299 : vector<8x32xf32> to vector<8x32xbf16>
    %cst_90 = arith.constant dense<0.000000e+00> : vector<8x128xf32>
    %307 = tpu.matmul %306, %225, %cst_90 {dimension_numbers = #tpu.dot_dimension_numbers<[1], [0], [0], [1], [0, 0, 1, 1], [], []>} : vector<8x32xbf16>, vector<32x128xbf16>, vector<8x128xf32> -> vector<8x128xf32>
    %308 = arith.addf %305, %307 : vector<8x128xf32>
    %309 = vector.extract_strided_slice %308 {offsets = [0, 0], sizes = [8, 96], strides = [1, 1]} : vector<8x128xf32> to vector<8x96xf32>
    %310 = arith.negf %309 : vector<8x96xf32>
    %311 = math.exp %310 : vector<8x96xf32>
    %cst_91 = arith.constant 1.000000e+00 : f32
    %312 = vector.broadcast %cst_91 : f32 to vector<8x96xf32>
    %313 = arith.addf %312, %311 : vector<8x96xf32>
    %314 = arith.divf %312, %313 : vector<8x96xf32>
    %315 = vector.extract_strided_slice %308 {offsets = [0, 96], sizes = [8, 32], strides = [1, 1]} : vector<8x128xf32> to vector<8x32xf32>
    %316 = math.tanh %315 : vector<8x32xf32>
    %317 = vector.extract_strided_slice %314 {offsets = [0, 0], sizes = [8, 32], strides = [1, 1]} : vector<8x96xf32> to vector<8x32xf32>
    %318 = vector.extract_strided_slice %314 {offsets = [0, 32], sizes = [8, 32], strides = [1, 1]} : vector<8x96xf32> to vector<8x32xf32>
    %319 = vector.extract_strided_slice %314 {offsets = [0, 64], sizes = [8, 32], strides = [1, 1]} : vector<8x96xf32> to vector<8x32xf32>
    %320 = arith.mulf %318, %297 : vector<8x32xf32>
    %321 = arith.mulf %317, %316 : vector<8x32xf32>
    %322 = arith.addf %320, %321 : vector<8x32xf32>
    %323 = math.tanh %322 : vector<8x32xf32>
    %324 = arith.mulf %319, %323 : vector<8x32xf32>
    %325 = arith.index_cast %303 : i32 to index
    %c0_92 = arith.constant 0 : index
    %326 = vector.load %arg15[%325, %c0_92] : memref<64x32xf32, #tpu.memory_space<vmem>>, vector<8x32xf32>
    tpu.vector_store %arg15[%325, %c0_92], %324 {strides = array<i32>} : memref<64x32xf32, #tpu.memory_space<vmem>>, vector<8x32xf32>,
    %c4_i32_93 = arith.constant 4 : i32
    %c8_i32_94 = arith.constant 8 : i32
    %327 = arith.muli %c4_i32_93, %c8_i32_94 : i32
    %328 = tpu.assume_multiple %327, 8 : i32
    %329 = arith.index_cast %328 : i32 to index
    %c0_95 = arith.constant 0 : index
    %330 = vector.load %arg13[%329, %c0_95] : memref<64x128xf32, #tpu.memory_space<vmem>>, vector<8x128xf32>
    %331 = arith.truncf %324 : vector<8x32xf32> to vector<8x32xbf16>
    %cst_96 = arith.constant dense<0.000000e+00> : vector<8x128xf32>
    %332 = tpu.matmul %331, %225, %cst_96 {dimension_numbers = #tpu.dot_dimension_numbers<[1], [0], [0], [1], [0, 0, 1, 1], [], []>} : vector<8x32xbf16>, vector<32x128xbf16>, vector<8x128xf32> -> vector<8x128xf32>
    %333 = arith.addf %330, %332 : vector<8x128xf32>
    %334 = vector.extract_strided_slice %333 {offsets = [0, 0], sizes = [8, 96], strides = [1, 1]} : vector<8x128xf32> to vector<8x96xf32>
    %335 = arith.negf %334 : vector<8x96xf32>
    %336 = math.exp %335 : vector<8x96xf32>
    %cst_97 = arith.constant 1.000000e+00 : f32
    %337 = vector.broadcast %cst_97 : f32 to vector<8x96xf32>
    %338 = arith.addf %337, %336 : vector<8x96xf32>
    %339 = arith.divf %337, %338 : vector<8x96xf32>
    %340 = vector.extract_strided_slice %333 {offsets = [0, 96], sizes = [8, 32], strides = [1, 1]} : vector<8x128xf32> to vector<8x32xf32>
    %341 = math.tanh %340 : vector<8x32xf32>
    %342 = vector.extract_strided_slice %339 {offsets = [0, 0], sizes = [8, 32], strides = [1, 1]} : vector<8x96xf32> to vector<8x32xf32>
    %343 = vector.extract_strided_slice %339 {offsets = [0, 32], sizes = [8, 32], strides = [1, 1]} : vector<8x96xf32> to vector<8x32xf32>
    %344 = vector.extract_strided_slice %339 {offsets = [0, 64], sizes = [8, 32], strides = [1, 1]} : vector<8x96xf32> to vector<8x32xf32>
    %345 = arith.mulf %343, %322 : vector<8x32xf32>
    %346 = arith.mulf %342, %341 : vector<8x32xf32>
    %347 = arith.addf %345, %346 : vector<8x32xf32>
    %348 = math.tanh %347 : vector<8x32xf32>
    %349 = arith.mulf %344, %348 : vector<8x32xf32>
    %350 = arith.index_cast %328 : i32 to index
    %c0_98 = arith.constant 0 : index
    %351 = vector.load %arg15[%350, %c0_98] : memref<64x32xf32, #tpu.memory_space<vmem>>, vector<8x32xf32>
    tpu.vector_store %arg15[%350, %c0_98], %349 {strides = array<i32>} : memref<64x32xf32, #tpu.memory_space<vmem>>, vector<8x32xf32>,
    %c5_i32_99 = arith.constant 5 : i32
    %c8_i32_100 = arith.constant 8 : i32
    %352 = arith.muli %c5_i32_99, %c8_i32_100 : i32
    %353 = tpu.assume_multiple %352, 8 : i32
    %354 = arith.index_cast %353 : i32 to index
    %c0_101 = arith.constant 0 : index
    %355 = vector.load %arg13[%354, %c0_101] : memref<64x128xf32, #tpu.memory_space<vmem>>, vector<8x128xf32>
    %356 = arith.truncf %349 : vector<8x32xf32> to vector<8x32xbf16>
    %cst_102 = arith.constant dense<0.000000e+00> : vector<8x128xf32>
    %357 = tpu.matmul %356, %225, %cst_102 {dimension_numbers = #tpu.dot_dimension_numbers<[1], [0], [0], [1], [0, 0, 1, 1], [], []>} : vector<8x32xbf16>, vector<32x128xbf16>, vector<8x128xf32> -> vector<8x128xf32>
    %358 = arith.addf %355, %357 : vector<8x128xf32>
    %359 = vector.extract_strided_slice %358 {offsets = [0, 0], sizes = [8, 96], strides = [1, 1]} : vector<8x128xf32> to vector<8x96xf32>
    %360 = arith.negf %359 : vector<8x96xf32>
    %361 = math.exp %360 : vector<8x96xf32>
    %cst_103 = arith.constant 1.000000e+00 : f32
    %362 = vector.broadcast %cst_103 : f32 to vector<8x96xf32>
    %363 = arith.addf %362, %361 : vector<8x96xf32>
    %364 = arith.divf %362, %363 : vector<8x96xf32>
    %365 = vector.extract_strided_slice %358 {offsets = [0, 96], sizes = [8, 32], strides = [1, 1]} : vector<8x128xf32> to vector<8x32xf32>
    %366 = math.tanh %365 : vector<8x32xf32>
    %367 = vector.extract_strided_slice %364 {offsets = [0, 0], sizes = [8, 32], strides = [1, 1]} : vector<8x96xf32> to vector<8x32xf32>
    %368 = vector.extract_strided_slice %364 {offsets = [0, 32], sizes = [8, 32], strides = [1, 1]} : vector<8x96xf32> to vector<8x32xf32>
    %369 = vector.extract_strided_slice %364 {offsets = [0, 64], sizes = [8, 32], strides = [1, 1]} : vector<8x96xf32> to vector<8x32xf32>
    %370 = arith.mulf %368, %347 : vector<8x32xf32>
    %371 = arith.mulf %367, %366 : vector<8x32xf32>
    %372 = arith.addf %370, %371 : vector<8x32xf32>
    %373 = math.tanh %372 : vector<8x32xf32>
    %374 = arith.mulf %369, %373 : vector<8x32xf32>
    %375 = arith.index_cast %353 : i32 to index
    %c0_104 = arith.constant 0 : index
    %376 = vector.load %arg15[%375, %c0_104] : memref<64x32xf32, #tpu.memory_space<vmem>>, vector<8x32xf32>
    tpu.vector_store %arg15[%375, %c0_104], %374 {strides = array<i32>} : memref<64x32xf32, #tpu.memory_space<vmem>>, vector<8x32xf32>,
    %c6_i32_105 = arith.constant 6 : i32
    %c8_i32_106 = arith.constant 8 : i32
    %377 = arith.muli %c6_i32_105, %c8_i32_106 : i32
    %378 = tpu.assume_multiple %377, 8 : i32
    %379 = arith.index_cast %378 : i32 to index
    %c0_107 = arith.constant 0 : index
    %380 = vector.load %arg13[%379, %c0_107] : memref<64x128xf32, #tpu.memory_space<vmem>>, vector<8x128xf32>
    %381 = arith.truncf %374 : vector<8x32xf32> to vector<8x32xbf16>
    %cst_108 = arith.constant dense<0.000000e+00> : vector<8x128xf32>
    %382 = tpu.matmul %381, %225, %cst_108 {dimension_numbers = #tpu.dot_dimension_numbers<[1], [0], [0], [1], [0, 0, 1, 1], [], []>} : vector<8x32xbf16>, vector<32x128xbf16>, vector<8x128xf32> -> vector<8x128xf32>
    %383 = arith.addf %380, %382 : vector<8x128xf32>
    %384 = vector.extract_strided_slice %383 {offsets = [0, 0], sizes = [8, 96], strides = [1, 1]} : vector<8x128xf32> to vector<8x96xf32>
    %385 = arith.negf %384 : vector<8x96xf32>
    %386 = math.exp %385 : vector<8x96xf32>
    %cst_109 = arith.constant 1.000000e+00 : f32
    %387 = vector.broadcast %cst_109 : f32 to vector<8x96xf32>
    %388 = arith.addf %387, %386 : vector<8x96xf32>
    %389 = arith.divf %387, %388 : vector<8x96xf32>
    %390 = vector.extract_strided_slice %383 {offsets = [0, 96], sizes = [8, 32], strides = [1, 1]} : vector<8x128xf32> to vector<8x32xf32>
    %391 = math.tanh %390 : vector<8x32xf32>
    %392 = vector.extract_strided_slice %389 {offsets = [0, 0], sizes = [8, 32], strides = [1, 1]} : vector<8x96xf32> to vector<8x32xf32>
    %393 = vector.extract_strided_slice %389 {offsets = [0, 32], sizes = [8, 32], strides = [1, 1]} : vector<8x96xf32> to vector<8x32xf32>
    %394 = vector.extract_strided_slice %389 {offsets = [0, 64], sizes = [8, 32], strides = [1, 1]} : vector<8x96xf32> to vector<8x32xf32>
    %395 = arith.mulf %393, %372 : vector<8x32xf32>
    %396 = arith.mulf %392, %391 : vector<8x32xf32>
    %397 = arith.addf %395, %396 : vector<8x32xf32>
    %398 = math.tanh %397 : vector<8x32xf32>
    %399 = arith.mulf %394, %398 : vector<8x32xf32>
    %400 = arith.index_cast %378 : i32 to index
    %c0_110 = arith.constant 0 : index
    %401 = vector.load %arg15[%400, %c0_110] : memref<64x32xf32, #tpu.memory_space<vmem>>, vector<8x32xf32>
    tpu.vector_store %arg15[%400, %c0_110], %399 {strides = array<i32>} : memref<64x32xf32, #tpu.memory_space<vmem>>, vector<8x32xf32>,
    %c7_i32_111 = arith.constant 7 : i32
    %c8_i32_112 = arith.constant 8 : i32
    %402 = arith.muli %c7_i32_111, %c8_i32_112 : i32
    %403 = tpu.assume_multiple %402, 8 : i32
    %404 = arith.index_cast %403 : i32 to index
    %c0_113 = arith.constant 0 : index
    %405 = vector.load %arg13[%404, %c0_113] : memref<64x128xf32, #tpu.memory_space<vmem>>, vector<8x128xf32>
    %406 = arith.truncf %399 : vector<8x32xf32> to vector<8x32xbf16>
    %cst_114 = arith.constant dense<0.000000e+00> : vector<8x128xf32>
    %407 = tpu.matmul %406, %225, %cst_114 {dimension_numbers = #tpu.dot_dimension_numbers<[1], [0], [0], [1], [0, 0, 1, 1], [], []>} : vector<8x32xbf16>, vector<32x128xbf16>, vector<8x128xf32> -> vector<8x128xf32>
    %408 = arith.addf %405, %407 : vector<8x128xf32>
    %409 = vector.extract_strided_slice %408 {offsets = [0, 0], sizes = [8, 96], strides = [1, 1]} : vector<8x128xf32> to vector<8x96xf32>
    %410 = arith.negf %409 : vector<8x96xf32>
    %411 = math.exp %410 : vector<8x96xf32>
    %cst_115 = arith.constant 1.000000e+00 : f32
    %412 = vector.broadcast %cst_115 : f32 to vector<8x96xf32>
    %413 = arith.addf %412, %411 : vector<8x96xf32>
    %414 = arith.divf %412, %413 : vector<8x96xf32>
    %415 = vector.extract_strided_slice %408 {offsets = [0, 96], sizes = [8, 32], strides = [1, 1]} : vector<8x128xf32> to vector<8x32xf32>
    %416 = math.tanh %415 : vector<8x32xf32>
    %417 = vector.extract_strided_slice %414 {offsets = [0, 0], sizes = [8, 32], strides = [1, 1]} : vector<8x96xf32> to vector<8x32xf32>
    %418 = vector.extract_strided_slice %414 {offsets = [0, 32], sizes = [8, 32], strides = [1, 1]} : vector<8x96xf32> to vector<8x32xf32>
    %419 = vector.extract_strided_slice %414 {offsets = [0, 64], sizes = [8, 32], strides = [1, 1]} : vector<8x96xf32> to vector<8x32xf32>
    %420 = arith.mulf %418, %397 : vector<8x32xf32>
    %421 = arith.mulf %417, %416 : vector<8x32xf32>
    %422 = arith.addf %420, %421 : vector<8x32xf32>
    %423 = math.tanh %422 : vector<8x32xf32>
    %424 = arith.mulf %419, %423 : vector<8x32xf32>
    %425 = arith.index_cast %403 : i32 to index
    %c0_116 = arith.constant 0 : index
    %426 = vector.load %arg15[%425, %c0_116] : memref<64x32xf32, #tpu.memory_space<vmem>>, vector<8x32xf32>
    tpu.vector_store %arg15[%425, %c0_116], %424 {strides = array<i32>} : memref<64x32xf32, #tpu.memory_space<vmem>>, vector<8x32xf32>,
    %c8_i32_117 = arith.constant 8 : i32
    %c1 = arith.constant 1 : index
    %c0_118 = arith.constant 0 : index
    %c0_119 = arith.constant 0 : index
    %427 = vector.load %arg11[%c1, %c0_118, %c0_119] : memref<2x8x32xf32, #tpu.memory_space<vmem>>, vector<1x8x32xf32>
    %428 = vector.shape_cast %427 : vector<1x8x32xf32> to vector<8x32xf32>
    %429 = vector.shape_cast %424 : vector<8x32xf32> to vector<1x8x32xf32>
    tpu.vector_store %arg11[%c1, %c0_118, %c0_119], %429 {strides = array<i32>} : memref<2x8x32xf32, #tpu.memory_space<vmem>>, vector<1x8x32xf32>,
    %c1_120 = arith.constant 1 : index
    %c0_121 = arith.constant 0 : index
    %c0_122 = arith.constant 0 : index
    %430 = vector.load %arg12[%c1_120, %c0_121, %c0_122] : memref<2x8x32xf32, #tpu.memory_space<vmem>>, vector<1x8x32xf32>
    %431 = vector.shape_cast %430 : vector<1x8x32xf32> to vector<8x32xf32>
    %432 = vector.shape_cast %422 : vector<8x32xf32> to vector<1x8x32xf32>
    tpu.vector_store %arg12[%c1_120, %c0_121, %c0_122], %432 {strides = array<i32>} : memref<2x8x32xf32, #tpu.memory_space<vmem>>, vector<1x8x32xf32>,
    %c48 = arith.constant 48 : index
    %c0_123 = arith.constant 0 : index
    %433 = vector.load %arg15[%c48, %c0_123] : memref<64x32xf32, #tpu.memory_space<vmem>>, vector<16x32xf32>
    %434 = arith.truncf %433 : vector<16x32xf32> to vector<16x32xbf16>
    %c0_124 = arith.constant 0 : index
    %c0_125 = arith.constant 0 : index
    %435 = vector.load %arg8[%c0_124, %c0_125] : memref<32x128xbf16, #tpu.memory_space<vmem>>, vector<32x128xbf16>
    %cst_126 = arith.constant dense<0.000000e+00> : vector<16x128xf32>
    %436 = tpu.matmul %434, %435, %cst_126 {dimension_numbers = #tpu.dot_dimension_numbers<[1], [0], [0], [1], [0, 0, 1, 1], [], []>} : vector<16x32xbf16>, vector<32x128xbf16>, vector<16x128xf32> -> vector<16x128xf32>
    %c0_127 = arith.constant 0 : index
    %c0_128 = arith.constant 0 : index
    %437 = vector.load %arg9[%c0_127, %c0_128] : memref<1x128xf32, #tpu.memory_space<vmem>>, vector<1x128xf32>
    %438 = vector.broadcast %437 : vector<1x128xf32> to vector<16x128xf32>
    %439 = arith.addf %436, %438 : vector<16x128xf32>
    %440 = vector.shape_cast %439 : vector<16x128xf32> to vector<2x8x128xf32>
    %c0_129 = arith.constant 0 : index
    %c0_130 = arith.constant 0 : index
    %c0_131 = arith.constant 0 : index
    %441 = vector.load %arg10[%c0_129, %c0_130, %c0_131] : memref<2x8x128xf32, #tpu.memory_space<vmem>>, vector<2x8x128xf32>
    tpu.vector_store %arg10[%c0_129, %c0_130, %c0_131], %440 {strides = array<i32>} : memref<2x8x128xf32, #tpu.memory_space<vmem>>, vector<2x8x128xf32>,
    return
  }
  func.func @transform_0(%arg0: i32) -> (i32, i32, i32) {
    %c0_i32 = arith.constant 0 : i32
    %c0_i32_0 = arith.constant 0 : i32
    %c0_i32_1 = arith.constant 0 : i32
    return %c0_i32, %arg0, %c0_i32_0 : i32, i32, i32
  }
  func.func @transform_1(%arg0: i32) -> (i32, i32) {
    %c0_i32 = arith.constant 0 : i32
    %c0_i32_0 = arith.constant 0 : i32
    %c0_i32_1 = arith.constant 0 : i32
    return %c0_i32, %c0_i32_0 : i32, i32
  }
  func.func @transform_2(%arg0: i32) -> (i32, i32) {
    %c0_i32 = arith.constant 0 : i32
    %c0_i32_0 = arith.constant 0 : i32
    %c0_i32_1 = arith.constant 0 : i32
    return %c0_i32, %c0_i32_0 : i32, i32
  }
  func.func @transform_3(%arg0: i32) -> (i32, i32) {
    %c0_i32 = arith.constant 0 : i32
    %c0_i32_0 = arith.constant 0 : i32
    %c0_i32_1 = arith.constant 0 : i32
    return %c0_i32, %c0_i32_0 : i32, i32
  }
  func.func @transform_4(%arg0: i32) -> (i32, i32) {
    %c0_i32 = arith.constant 0 : i32
    %c0_i32_0 = arith.constant 0 : i32
    %c0_i32_1 = arith.constant 0 : i32
    return %c0_i32, %c0_i32_0 : i32, i32
  }
  func.func @transform_5(%arg0: i32) -> (i32, i32) {
    %c0_i32 = arith.constant 0 : i32
    %c0_i32_0 = arith.constant 0 : i32
    %c0_i32_1 = arith.constant 0 : i32
    return %c0_i32, %c0_i32_0 : i32, i32
  }
  func.func @transform_6(%arg0: i32) -> (i32, i32) {
    %c0_i32 = arith.constant 0 : i32
    %c0_i32_0 = arith.constant 0 : i32
    %c0_i32_1 = arith.constant 0 : i32
    return %c0_i32, %c0_i32_0 : i32, i32
  }
  func.func @transform_7(%arg0: i32) -> (i32, i32) {
    %c0_i32 = arith.constant 0 : i32
    %c0_i32_0 = arith.constant 0 : i32
    %c0_i32_1 = arith.constant 0 : i32
    return %c0_i32, %c0_i32_0 : i32, i32
  }
  func.func @transform_8(%arg0: i32) -> (i32, i32) {
    %c0_i32 = arith.constant 0 : i32
    %c0_i32_0 = arith.constant 0 : i32
    %c0_i32_1 = arith.constant 0 : i32
    return %c0_i32, %c0_i32_0 : i32, i32
  }
  func.func @transform_9(%arg0: i32) -> (i32, i32, i32) {
    %c0_i32 = arith.constant 0 : i32
    %c0_i32_0 = arith.constant 0 : i32
    %c0_i32_1 = arith.constant 0 : i32
    return %c0_i32, %arg0, %c0_i32_0 : i32, i32, i32
  }
  func.func @transform_10(%arg0: i32) -> (i32, i32, i32) {
    %c0_i32 = arith.constant 0 : i32
    %c0_i32_0 = arith.constant 0 : i32
    %c0_i32_1 = arith.constant 0 : i32
    return %c0_i32, %arg0, %c0_i32_0 : i32, i32, i32
  }
  func.func @transform_11(%arg0: i32) -> (i32, i32, i32) {
    %c0_i32 = arith.constant 0 : i32
    %c0_i32_0 = arith.constant 0 : i32
    %c0_i32_1 = arith.constant 0 : i32
    return %c0_i32, %arg0, %c0_i32_0 : i32, i32, i32
  }
}

</mosaic_0001>

<bundles_post_ra>
// kernel: lstm_forward.1
= control target key start
LH: loop header
LB: loop body
LE: loop exit
PB: predicated region body
PF: predicated region fallthrough
CT: control target
= control target key end

     0   :  { %vm69_vm0 = vcmask 1041408   ;;  %v2070_v1 = vmov 0.0   ;;  %vm2071_vm1 = vmmov 0   ;;  %vm56_vm2 = vcmask 31744   ;;  %s2073_s12 = smov 32   ;;  %s2075_s28 = smov 96   ;;  %s2568_s1 = inlined_call_operand.vmem [shape: bf16[4,128], index: 1, kind: input, shape index: {}]   ;;  %s2569_s2 = inlined_call_operand.vmem [shape: bf16[32,128], index: 2, kind: input, shape index: {}]   ;;  %s2570_s0 = inlined_call_operand.vmem [shape: f32[8,8,4], index: 0, kind: input, shape index: {}]   ;;  %s2571_s3 = inlined_call_operand.vmem [shape: f32[1,128], index: 3, kind: input, shape index: {}]   ;;  %s2572_s4 = inlined_call_operand.vmem [shape: bf16[32,128], index: 4, kind: input, shape index: {}]   ;;  %s2573_s5 = inlined_call_operand.vmem [shape: bf16[32,128], index: 5, kind: input, shape index: {}]   ;;  %s2574_s6 = inlined_call_operand.vmem [shape: f32[1,128], index: 6, kind: input, shape index: {}]   ;;  %s2575_s10 = inlined_call_operand.vmem [shape: f32[2,8,32], index: 10, kind: output, shape index: {1}]   ;;  %s2576_s11 = inlined_call_operand.vmem [shape: f32[2,8,32], index: 11, kind: output, shape index: {2}]   ;;  %s2577_s7 = inlined_call_operand.vmem [shape: bf16[32,128], index: 7, kind: input, shape index: {}]   ;;  %s2578_s8 = inlined_call_operand.vmem [shape: f32[1,128], index: 8, kind: input, shape index: {}]   ;;  %s2579_s9 = inlined_call_operand.vmem [shape: f32[2,8,128], index: 9, kind: output, shape index: {0}]  }
   0x1   :  { %v48_v0 = vld [vmem:[%s2568_s1] sm:$0x3]  ;;  %1779 = vmatprep.subr.bf16.mxu1 %v2070_v1  ;;  %1783 = vmatprep.mubr.msk.bf16.mxu1 %vm2071_vm1, %v2070_v1  ;;  %v37_v5 = vld [vmem:[%s2570_s0 + $0x8] sm:$0xff]  ;;  %v38_v7 = vld [vmem:[%s2570_s0 + $0x10] sm:$0xff]  ;;  %v2072_v11 = vmov 0   ;;  %vm163_vm3 = vcmask 261120  }
   0x2   :  { %1927 = vmatprep.subr.msk.bf16.mxu0 %vm69_vm0, %v48_v0  ;;  %v71_v2 = vsel %vm69_vm0, %v48_v0, 0  ;;  %v2145_v3 = vld [vmem:[%s2569_s2] sm:$0xff]   ;;  %v39_v8 = vld [vmem:[%s2570_s0 + $0x18] sm:$0xff]  ;;  %v2163_v10 = vld [vmem:[%s2569_s2 + $0x8] sm:$0xff]  }
   0x3   :  { %v36_v4 = vld [vmem:[%s2570_s0] sm:$0xff]  ;;  %1770 = vmatpush3.bf16.msra.mxu0 %v71_v2  ;;  %1780 = vmatpush3.bf16.msra.mxu1 %v2145_v3  ;;  %v45_v9 = vpack.c.bf16 %v39_v8, %v38_v7  ;;  %v41_v55 = vld [vmem:[%s2570_s0 + $0x28] sm:$0xff]  ;;  %v42_v56 = vld [vmem:[%s2570_s0 + $0x30] sm:$0xff] }
   0x4   :  { %v44_v6 = vpack.c.bf16 %v37_v5, %v36_v4  ;;  %1795 = vmatprep.subr.bf16.mxu0 %v2070_v1  ;;  %1781 = vmatprep.subr.bf16.mxu1 %v2070_v1  ;;  %v2185_v12 = vld [vmem:[%s2571_s3] ss:$0 sm:$0xff]  ;;  %s2074_s3 = smov 64   ;;  %v43_v58 = vld [vmem:[%s2570_s0 + $0x38] sm:$0xff] }
   0x5   :  { %v40_v54 = vld [vmem:[%s2570_s0 + $0x20] sm:$0xff]  ;;  %v47_v59 = vpack.c.bf16 %v43_v58, %v42_v56 }
   0x6   :  { %1771 = vmatprep.mubr.msk.bf16.mxu0 %vm56_vm2, %v44_v6  ;;  %v46_v57 = vpack.c.bf16 %v41_v55, %v40_v54 }
   0x7   :  { %1772 = vmatmul.mubr.msk.bf16.vlgmr.msra.gmra.mrb[0].mxu0 %vm56_vm2, %v45_v9  ;;  %1782 = vmatpush3.bf16.msra.mxu1 %v2163_v10 }
   0x8   :  { %1796 = vmatpush3.bf16.msra.mxu0 %v2145_v3  ;;  %1787 = vmatprep.subr.bf16.mxu1 %v2070_v1 }
   0x9   :  { %1797 = vmatprep.subr.bf16.mxu0 %v2070_v1  ;;  %1775 = vmatprep.mubr.msk.bf16.mxu0 %vm56_vm2, %v46_v57 }
   0xa   :  { %1784 = vmatmul.mubr.bf16.vlgmr.msra.gmra.mrb[0].mxu1 %v2072_v11 }
   0xb   :  { %1788 = vmatpush3.bf16.msra.mxu1 %v2145_v3  ;;  %1791 = vmatprep.mubr.msk.bf16.mxu1 %vm2071_vm1, %v2070_v1 }
   0xc   :  { %1798 = vmatpush3.bf16.msra.mxu0 %v2163_v10  ;;  %1789 = vmatprep.subr.bf16.mxu1 %v2070_v1 }
   0xd   :  { %1811 = vmatprep.subr.bf16.mxu0 %v2070_v1 }
   0xf   :  { %1790 = vmatpush3.bf16.msra.mxu1 %v2163_v10  ;;  %1776 = vmatmul.mubr.msk.bf16.gmra.mrb[4].mxu0 %vm56_vm2, %v47_v59 }
  0x10   :  { %1803 = vmatprep.subr.bf16.mxu1 %v2070_v1  ;;  %1799 = vmatprep.mubr.msk.bf16.mxu0 %vm2071_vm1, %v2070_v1 }
  0xda   :  { %v2187_v13 = vpop.f32.mrb[0].mxu0 }
  0xdb   :  { %v107_v14 = vpop.f32.mrb[1].mxu0  ;;  %v116_v7 = vadd.f32 %v2187_v13, %v2185_v12 }
  0xdc   :  { %v108_v15 = vadd.f32 %v2185_v12, %v107_v14  ;;  %v2190_v16 = vpop.f32.mrb[2].mxu0 }
  0xdd   :  { %v110_v17 = vpop.f32.mrb[3].mxu0  ;;  %v201_v18 = vpop.f32.mrb[0].mxu1 }
  0xde   :  { %v207_v19 = vadd.f32 %v201_v18, %v108_v15  ;;  %v1785_v20 = vpop.f32.mrb[1].mxu1  ;;  %v111_v38 = vadd.f32 %v2185_v12, %v110_v17 }
  0xdf   :  { %v204_v21 = vpop.f32.mrb[2].mxu1 }
  0xe0   :  { %1942 = vtanh.f32 %v207_v19  ;;  %v1786_v22 = vpop.f32.mrb[3].mxu1  ;;  %v1662_v24 = vmul.f32 -1.442695, %v207_v19 }
  0xe2   :  { %1944 = vpow2.f32 %v1662_v24  ;;  %v2232_v0 = vpop.f32.mrb[4].mxu0 }
  0xe3   :  { %v2234_v2 = vpop.f32.mrb[5].mxu0 }
  0xe4   :  { %v2236_v4 = vpop.f32.mrb[6].mxu0 }
  0xe5   :  { %v2238_v5 = vpop.f32.mrb[7].mxu0 }
  0xea   :  { %v1943_v23 = vpop.eup %1942 }
  0xeb   :  { %217 = vrot.lane.b32.xlu0 %v1943_v23, %s2073_s12 }
  0xec   :  { %v1945_v25 = vpop.eup %1944 }
  0xed   :  { %v211_v26 = vadd.f32 1.0, %v1945_v25 }
  0xef   :  { %1946 = vrcp.f32 %v211_v26 }
  0xf9   :  { %v1947_v27 = vpop.eup %1946 }
  0xfa   :  { %v215_v30 = vmul.f32 0.0, %v1947_v27 }
 0x15d   :  { %v218_v28 = vpop.permute.xlu0 %217 }
 0x15e   :  { %v220_v29 = vmul.f32 %v1947_v27, %v218_v28 }
 0x160   :  { %222 = vrot.lane.b32.xlu0 %v220_v29, %s2073_s12 }
 0x1d2   :  { %v223_v31 = vpop.permute.xlu0 %222 }
 0x1d3   :  { %v225_v32 = vadd.f32 %v223_v31, %v215_v30 }
 0x1d5   :  { %1948 = vtanh.f32 %v225_v32 }
 0x1df   :  { %v1949_v33 = vpop.eup %1948 }
 0x1e0   :  { %228 = vrot.lane.b32.xlu1 %v1949_v33, %s2073_s12 }
 0x252   :  { %v229_v34 = vpop.permute.xlu1 %228 }
 0x253   :  { %v2195_v35 = vmul.f32 %v1947_v27, %v229_v34 }
 0x255   :  { %v239_v36 = vpack.c.bf16 %v2195_v35, %v2195_v35 }
 0x257   :  { %241 = vrot.lane.b32.xlu1 %v239_v36, %s2074_s3 }
 0x2c9   :  { %v242_v37 = vpop.permute.xlu1 %241 }
 0x2ca   :  { %1792 = vmatmul.mubr.msk.bf16.vlgmr.msra.gmra.mrb[4].mxu1 %vm163_vm3, %v242_v37 }
 0x2cb   :  { %1804 = vmatpush3.bf16.msra.mxu1 %v2145_v3  ;;  %1807 = vmatprep.mubr.msk.bf16.mxu1 %vm2071_vm1, %v2070_v1 }
 0x2cc   :  { %1805 = vmatprep.subr.bf16.mxu1 %v2070_v1 }
 0x2cf   :  { %1806 = vmatpush3.bf16.msra.mxu1 %v2163_v10 }
 0x2d0   :  { %1819 = vmatprep.subr.bf16.mxu1 %v2070_v1 }
 0x39d   :  { %v280_v39 = vpop.f32.mrb[4].mxu1 }
 0x39e   :  { %v286_v40 = vadd.f32 %v280_v39, %v111_v38  ;;  %v1793_v41 = vpop.f32.mrb[5].mxu1 }
 0x39f   :  { %v283_v42 = vpop.f32.mrb[6].mxu1 }
 0x3a0   :  { %1950 = vtanh.f32 %v286_v40  ;;  %v1794_v43 = vpop.f32.mrb[7].mxu1  ;;  %v1664_v45 = vmul.f32 -1.442695, %v286_v40 }
 0x3a2   :  { %1952 = vpow2.f32 %v1664_v45 }
 0x3aa   :  { %v1951_v44 = vpop.eup %1950 }
 0x3ab   :  { %296 = vrot.lane.b32.xlu0 %v1951_v44, %s2073_s12 }
 0x3ac   :  { %v1953_v46 = vpop.eup %1952 }
 0x3ad   :  { %v290_v47 = vadd.f32 1.0, %v1953_v46 }
 0x3af   :  { %1954 = vrcp.f32 %v290_v47 }
 0x3b9   :  { %v1955_v48 = vpop.eup %1954 }
 0x3ba   :  { %v294_v51 = vmul.f32 %v1955_v48, %v225_v32  ;;  %v119_v32 = vadd.f32 %v2190_v16, %v2185_v12 }
 0x41d   :  { %v297_v49 = vpop.permute.xlu0 %296 }
 0x41e   :  { %v299_v50 = vmul.f32 %v1955_v48, %v297_v49 }
 0x420   :  { %301 = vrot.lane.b32.xlu1 %v299_v50, %s2073_s12 }
 0x492   :  { %v302_v52 = vpop.permute.xlu1 %301 }
 0x493   :  { %v304_v53 = vadd.f32 %v302_v52, %v294_v51 }
 0x495   :  { %1956 = vtanh.f32 %v304_v53 }
 0x49f   :  { %v1957_v60 = vpop.eup %1956 }
 0x4a0   :  { %307 = vrot.lane.b32.xlu0 %v1957_v60, %s2073_s12 }
 0x512   :  { %v308_v61 = vpop.permute.xlu0 %307 }
 0x513   :  { %v2227_v62 = vmul.f32 %v1955_v48, %v308_v61 }
 0x515   :  { %v319_v63 = vpack.c.bf16 %v2227_v62, %v2227_v62 }
 0x517   :  { %321 = vrot.lane.b32.xlu1 %v319_v63, %s2074_s3 }
 0x589   :  { %v322_v6 = vpop.permute.xlu1 %321 }
 0x58a   :  { %1800 = vmatmul.mubr.msk.bf16.vlgmr.msra.gmra.mrb[8].mxu0 %vm163_vm3, %v322_v6 }
 0x58b   :  { %1812 = vmatpush3.bf16.msra.mxu0 %v2145_v3  ;;  %1815 = vmatprep.mubr.msk.bf16.mxu0 %vm2071_vm1, %v2070_v1 }
 0x58c   :  { %1813 = vmatprep.subr.bf16.mxu0 %v2070_v1 }
 0x58f   :  { %1814 = vmatpush3.bf16.msra.mxu0 %v2163_v10 }
 0x590   :  { %1827 = vmatprep.subr.bf16.mxu0 %v2070_v1 }
 0x65d   :  { %v360_v8 = vpop.f32.mrb[8].mxu0 }
 0x65e   :  { %v366_v9 = vadd.f32 %v360_v8, %v116_v7  ;;  %v1801_v14 = vpop.f32.mrb[9].mxu0 }
 0x65f   :  { %v363_v15 = vpop.f32.mrb[10].mxu0 }
 0x660   :  { %1958 = vtanh.f32 %v366_v9  ;;  %v1802_v17 = vpop.f32.mrb[11].mxu0  ;;  %v1666_v19 = vmul.f32 -1.442695, %v366_v9 }
 0x662   :  { %1960 = vpow2.f32 %v1666_v19 }
 0x66a   :  { %v1959_v18 = vpop.eup %1958 }
 0x66b   :  { %376 = vrot.lane.b32.xlu0 %v1959_v18, %s2073_s12 }
 0x66c   :  { %v1961_v20 = vpop.eup %1960 }
 0x66d   :  { %v370_v21 = vadd.f32 1.0, %v1961_v20 }
 0x66f   :  { %1962 = vrcp.f32 %v370_v21  ;;  %v127_v21 = vadd.f32 %v2185_v12, %v2238_v5 }
 0x679   :  { %v1963_v22 = vpop.eup %1962 }
 0x67a   :  { %v374_v13 = vmul.f32 %v1963_v22, %v304_v53  ;;  %v124_v53 = vadd.f32 %v2185_v12, %v2234_v2 }
 0x6dd   :  { %v377_v23 = vpop.permute.xlu0 %376 }
 0x6de   :  { %v379_v24 = vmul.f32 %v1963_v22, %v377_v23 }
 0x6e0   :  { %381 = vrot.lane.b32.xlu1 %v379_v24, %s2073_s12 }
 0x752   :  { %v382_v25 = vpop.permute.xlu1 %381 }
 0x753   :  { %v384_v26 = vadd.f32 %v382_v25, %v374_v13 }
 0x755   :  { %1964 = vtanh.f32 %v384_v26 }
 0x75f   :  { %v1965_v27 = vpop.eup %1964 }
 0x760   :  { %387 = vrot.lane.b32.xlu0 %v1965_v27, %s2073_s12 }
 0x7d2   :  { %v388_v28 = vpop.permute.xlu0 %387 }
 0x7d3   :  { %v2252_v29 = vmul.f32 %v1963_v22, %v388_v28 }
 0x7d5   :  { %v399_v30 = vpack.c.bf16 %v2252_v29, %v2252_v29 }
 0x7d7   :  { %401 = vrot.lane.b32.xlu1 %v399_v30, %s2074_s3 }
 0x849   :  { %v402_v31 = vpop.permute.xlu1 %401 }
 0x84a   :  { %1808 = vmatmul.mubr.msk.bf16.vlgmr.msra.gmra.mrb[8].mxu1 %vm163_vm3, %v402_v31 }
 0x84b   :  { %1820 = vmatpush3.bf16.msra.mxu1 %v2145_v3  ;;  %1823 = vmatprep.mubr.msk.bf16.mxu1 %vm2071_vm1, %v2070_v1 }
 0x84c   :  { %1821 = vmatprep.subr.bf16.mxu1 %v2070_v1 }
 0x84f   :  { %1822 = vmatpush3.bf16.msra.mxu1 %v2163_v10 }
 0x850   :  { %1835 = vmatprep.subr.bf16.mxu1 %v2070_v1 }
 0x91d   :  { %v440_v33 = vpop.f32.mrb[8].mxu1 }
 0x91e   :  { %v446_v34 = vadd.f32 %v440_v33, %v119_v32  ;;  %v1809_v36 = vpop.f32.mrb[9].mxu1 }
 0x91f   :  { %v443_v37 = vpop.f32.mrb[10].mxu1 }
 0x920   :  { %1966 = vtanh.f32 %v446_v34  ;;  %v1810_v38 = vpop.f32.mrb[11].mxu1  ;;  %v1668_v40 = vmul.f32 -1.442695, %v446_v34 }
 0x922   :  { %1968 = vpow2.f32 %v1668_v40  ;;  %v132_v40 = vadd.f32 %v2232_v0, %v2185_v12 }
 0x92a   :  { %v1967_v39 = vpop.eup %1966 }
 0x92b   :  { %456 = vrot.lane.b32.xlu0 %v1967_v39, %s2073_s12 }
 0x92c   :  { %v1969_v41 = vpop.eup %1968 }
 0x92d   :  { %v450_v42 = vadd.f32 1.0, %v1969_v41 }
 0x92f   :  { %1970 = vrcp.f32 %v450_v42 }
 0x939   :  { %v1971_v43 = vpop.eup %1970 }
 0x93a   :  { %v454_v16 = vmul.f32 %v1971_v43, %v384_v26 }
 0x99d   :  { %v457_v44 = vpop.permute.xlu0 %456 }
 0x99e   :  { %v459_v45 = vmul.f32 %v1971_v43, %v457_v44 }
 0x9a0   :  { %461 = vrot.lane.b32.xlu1 %v459_v45, %s2073_s12 }
 0xa12   :  { %v462_v46 = vpop.permute.xlu1 %461 }
 0xa13   :  { %v464_v47 = vadd.f32 %v462_v46, %v454_v16 }
 0xa15   :  { %1972 = vtanh.f32 %v464_v47 }
 0xa1f   :  { %v1973_v48 = vpop.eup %1972 }
 0xa20   :  { %467 = vrot.lane.b32.xlu0 %v1973_v48, %s2073_s12 }
 0xa92   :  { %v468_v49 = vpop.permute.xlu0 %467 }
 0xa93   :  { %v2269_v50 = vmul.f32 %v1971_v43, %v468_v49 }
 0xa95   :  { %v479_v51 = vpack.c.bf16 %v2269_v50, %v2269_v50 }
 0xa97   :  { %481 = vrot.lane.b32.xlu1 %v479_v51, %s2074_s3 }
 0xb09   :  { %v482_v52 = vpop.permute.xlu1 %481 }
 0xb0a   :  { %1816 = vmatmul.mubr.msk.bf16.vlgmr.msra.gmra.mrb[12].mxu0 %vm163_vm3, %v482_v52 }
 0xb0b   :  { %1828 = vmatpush3.bf16.msra.mxu0 %v2145_v3  ;;  %1831 = vmatprep.mubr.msk.bf16.mxu0 %vm2071_vm1, %v2070_v1 }
 0xb0c   :  { %1829 = vmatprep.subr.bf16.mxu0 %v2070_v1 }
 0xb0f   :  { %1830 = vmatpush3.bf16.msra.mxu0 %v2163_v10 }
 0xbdd   :  { %v520_v54 = vpop.f32.mrb[12].mxu0 }
 0xbde   :  { %v526_v55 = vadd.f32 %v520_v54, %v124_v53  ;;  %v1817_v56 = vpop.f32.mrb[13].mxu0 }
 0xbdf   :  { %v523_v57 = vpop.f32.mrb[14].mxu0 }
 0xbe0   :  { %1974 = vtanh.f32 %v526_v55  ;;  %v1818_v58 = vpop.f32.mrb[15].mxu0  ;;  %v1670_v60 = vmul.f32 -1.442695, %v526_v55  ;;  %v1936_v57 = vld [vmem:[%s2572_s4] sm:$0xff]  }
 0xbe1   :  { %1843 = vmatprep.subr.bf16.mxu0 %v1936_v57 }
 0xbe2   :  { %1976 = vpow2.f32 %v1670_v60 }
 0xbea   :  { %v1975_v59 = vpop.eup %1974 }
 0xbeb   :  { %536 = vrot.lane.b32.xlu0 %v1975_v59, %s2073_s12 }
 0xbec   :  { %v1977_v61 = vpop.eup %1976 }
 0xbed   :  { %v530_v63 = vadd.f32 1.0, %v1977_v61 }
 0xbef   :  { %1978 = vrcp.f32 %v530_v63 }
 0xbf9   :  { %v1979_v6 = vpop.eup %1978 }
 0xbfa   :  { %v534_v2 = vmul.f32 %v1979_v6, %v464_v47 }
 0xc5d   :  { %v537_v7 = vpop.permute.xlu0 %536 }
 0xc5e   :  { %v539_v8 = vmul.f32 %v1979_v6, %v537_v7 }
 0xc60   :  { %541 = vrot.lane.b32.xlu1 %v539_v8, %s2073_s12 }
 0xcd2   :  { %v542_v9 = vpop.permute.xlu1 %541 }
 0xcd3   :  { %v544_v14 = vadd.f32 %v542_v9, %v534_v2  ;;  %v2344_v9 = vld [vmem:[%s2573_s5] sm:$0xff]  }
 0xcd5   :  { %1980 = vtanh.f32 %v544_v14 }
 0xcdf   :  { %v1981_v15 = vpop.eup %1980 }
 0xce0   :  { %547 = vrot.lane.b32.xlu0 %v1981_v15, %s2073_s12 }
 0xd52   :  { %v548_v17 = vpop.permute.xlu0 %547 }
 0xd53   :  { %v2285_v18 = vmul.f32 %v1979_v6, %v548_v17 }
 0xd55   :  { %v559_v19 = vpack.c.bf16 %v2285_v18, %v2285_v18 }
 0xd57   :  { %561 = vrot.lane.b32.xlu1 %v559_v19, %s2074_s3 }
 0xdc9   :  { %v562_v20 = vpop.permute.xlu1 %561 }
 0xdca   :  { %1824 = vmatmul.mubr.msk.bf16.vlgmr.msra.gmra.mrb[12].mxu1 %vm163_vm3, %v562_v20 }
 0xdcb   :  { %1836 = vmatpush3.bf16.msra.mxu1 %v2145_v3  ;;  %1839 = vmatprep.mubr.msk.bf16.mxu1 %vm2071_vm1, %v2070_v1 }
 0xdcc   :  { %1837 = vmatprep.subr.bf16.mxu1 %v2070_v1 }
 0xdcf   :  { %1838 = vmatpush3.bf16.msra.mxu1 %v2163_v10 }
 0xdd0   :  { %1855 = vmatprep.subr.bf16.mxu1 %v2070_v1 }
 0xe9d   :  { %v600_v22 = vpop.f32.mrb[12].mxu1 }
 0xe9e   :  { %v606_v23 = vadd.f32 %v600_v22, %v127_v21  ;;  %v1825_v24 = vpop.f32.mrb[13].mxu1 }
 0xe9f   :  { %v603_v13 = vpop.f32.mrb[14].mxu1 }
 0xea0   :  { %1982 = vtanh.f32 %v606_v23  ;;  %v1826_v25 = vpop.f32.mrb[15].mxu1  ;;  %v1672_v3 = vmul.f32 -1.442695, %v606_v23 }
 0xea2   :  { %1984 = vpow2.f32 %v1672_v3 }
 0xeaa   :  { %v1983_v26 = vpop.eup %1982 }
 0xeab   :  { %616 = vrot.lane.b32.xlu0 %v1983_v26, %s2073_s12  ;;  %v2381_v26 = vld [vmem:[%s2574_s6] ss:$0 sm:$0xff] }
 0xeac   :  { %v1985_v27 = vpop.eup %1984 }
 0xead   :  { %v610_v28 = vadd.f32 1.0, %v1985_v27 }
 0xeaf   :  { %1986 = vrcp.f32 %v610_v28 }
 0xeb9   :  { %v1987_v10 = vpop.eup %1986 }
 0xeba   :  { %v614_v5 = vmul.f32 %v1987_v10, %v544_v14  ;;  %v2352_v14 = vld [vmem:[%s2573_s5 + $0x8] sm:$0xff]  }
 0xf1d   :  { %v617_v30 = vpop.permute.xlu0 %616 }
 0xf1e   :  { %v619_v31 = vmul.f32 %v1987_v10, %v617_v30 }
 0xf20   :  { %621 = vrot.lane.b32.xlu1 %v619_v31, %s2073_s12 }
 0xf92   :  { %v622_v32 = vpop.permute.xlu1 %621 }
 0xf93   :  { %v624_v33 = vadd.f32 %v622_v32, %v614_v5 }
 0xf95   :  { %1988 = vtanh.f32 %v624_v33 }
 0xf9f   :  { %v1989_v34 = vpop.eup %1988 }
 0xfa0   :  { %627 = vrot.lane.b32.xlu0 %v1989_v34, %s2073_s12 }
0x1012   :  { %v628_v36 = vpop.permute.xlu0 %627 }
0x1013   :  { %v2302_v37 = vmul.f32 %v1987_v10, %v628_v36 }
0x1015   :  { %v639_v38 = vpack.c.bf16 %v2302_v37, %v2302_v37 }
0x1017   :  { %641 = vrot.lane.b32.xlu1 %v639_v38, %s2074_s3 }
0x1089   :  { %v642_v39 = vpop.permute.xlu1 %641 }
0x108a   :  { %1832 = vmatmul.mubr.msk.bf16.vlgmr.msra.gmra.mrb[16].mxu0 %vm163_vm3, %v642_v39 }
0x108b   :  { %1844 = vmatpush3.bf16.msra.mxu0 %v1936_v57 }
0x115d   :  { %v680_v41 = vpop.f32.mrb[16].mxu0 }
0x115e   :  { %v686_v42 = vadd.f32 %v680_v41, %v132_v40  ;;  %v1833_v43 = vpop.f32.mrb[17].mxu0 }
0x115f   :  { %v683_v44 = vpop.f32.mrb[18].mxu0 }
0x1160   :  { %1990 = vtanh.f32 %v686_v42  ;;  %v1834_v45 = vpop.f32.mrb[19].mxu0  ;;  %v1674_v46 = vmul.f32 -1.442695, %v686_v42 }
0x1162   :  { %1992 = vpow2.f32 %v1674_v46 }
0x116a   :  { %v1991_v16 = vpop.eup %1990 }
0x116b   :  { %696 = vrot.lane.b32.xlu0 %v1991_v16, %s2073_s12 }
0x116c   :  { %v1993_v47 = vpop.eup %1992 }
0x116d   :  { %v690_v48 = vadd.f32 1.0, %v1993_v47 }
0x116f   :  { %1994 = vrcp.f32 %v690_v48 }
0x1179   :  { %v1995_v49 = vpop.eup %1994 }
0x117a   :  { %v694_v0 = vmul.f32 %v1995_v49, %v624_v33 }
0x11dd   :  { %v697_v51 = vpop.permute.xlu0 %696 }
0x11de   :  { %v699_v52 = vmul.f32 %v1995_v49, %v697_v51 }
0x11e0   :  { %701 = vrot.lane.b32.xlu1 %v699_v52, %s2073_s12 }
0x11e4   :  { %233 = vrot.lane.b32.xlu1 %v2195_v35, %s2074_s3  ;;  %v1937_v35 = vld [vmem:[%s2572_s4 + $0x8] sm:$0xff]  }
0x11e5   :  { %1845 = vmatprep.subr.bf16.mxu0 %v1937_v35 }
0x11e6   :  { %1846 = vmatpush3.bf16.msra.mxu0 %v1937_v35 }
0x11e7   :  { %1871 = vmatprep.subr.bf16.mxu0 %v2070_v1 }
0x11e8   :  { %392 = vrot.lane.b32.xlu1 %v2252_v29, %s2074_s3 }
0x1252   :  { %v702_v53 = vpop.permute.xlu1 %701 }
0x1253   :  { %v2316_v54 = vadd.f32 %v702_v53, %v694_v0 }
0x1255   :  { %1996 = vtanh.f32 %v2316_v54 }
0x1256   :  { %v234_v55 = vpop.permute.xlu1 %233 }
0x1257   :  { %236 = vst.msk [vmem:[#allocation3] sm:$0xff] %vm163_vm3, %v234_v55 }
0x125a   :  { %v393_v56 = vpop.permute.xlu1 %392 }
0x125b   :  { %396 = vst.msk [vmem:[#allocation3 + $0x10] sm:$0xff] %vm163_vm3, %v393_v56 }
0x125e   :  { %v803_v6 = vld [vmem:[#allocation3] sm:$0xff] }
0x125f   :  { %v1997_v29 = vpop.eup %1996 }
0x1260   :  { %707 = vrot.lane.b32.xlu0 %v1997_v29, %s2073_s12 }
0x1264   :  { %312 = vrot.lane.b32.xlu0 %v2227_v62, %s2074_s3 }
0x1268   :  { %472 = vrot.lane.b32.xlu0 %v2269_v50, %s2074_s3  ;;  %v805_v50 = vld [vmem:[#allocation3 + $0x10] sm:$0xff] }
0x12d2   :  { %v708_v58 = vpop.permute.xlu0 %707 }
0x12d3   :  { %v2333_v59 = vmul.f32 %v1995_v49, %v708_v58 }
0x12d5   :  { %v719_v60 = vpack.c.bf16 %v2333_v59, %v2333_v59 }
0x12d6   :  { %v313_v61 = vpop.permute.xlu0 %312 }
0x12d7   :  { %316 = vst.msk [vmem:[#allocation3 + $0x8] sm:$0xff] %vm163_vm3, %v313_v61  ;;  %721 = vrot.lane.b32.xlu1 %v719_v60, %s2074_s3 }
0x12da   :  { %v473_v63 = vpop.permute.xlu0 %472 }
0x12db   :  { %476 = vst.msk [vmem:[#allocation3 + $0x18] sm:$0xff] %vm163_vm3, %v473_v63 }
0x12de   :  { %v804_v7 = vld [vmem:[#allocation3 + $0x8] sm:$0xff] }
0x12df   :  { %v811_v62 = vpack.c.bf16 %v804_v7, %v803_v6 }
0x12e1   :  { %1847 = vmatprep.mubr.msk.bf16.mxu0 %vm163_vm3, %v811_v62 }
0x12e2   :  { %v806_v8 = vld [vmem:[#allocation3 + $0x18] sm:$0xff] }
0x12e3   :  { %v812_v2 = vpack.c.bf16 %v806_v8, %v805_v50 }
0x12e5   :  { %1848 = vmatmul.mubr.msk.bf16.vlgmr.msra.gmra.mrb[20].mxu0 %vm163_vm3, %v812_v2 }
0x12e6   :  { %1872 = vmatpush3.bf16.msra.mxu0 %v2344_v9 }
0x12e7   :  { %1873 = vmatprep.subr.bf16.mxu0 %v2070_v1 }
0x12ea   :  { %1874 = vmatpush3.bf16.msra.mxu0 %v2352_v14 }
0x12eb   :  { %1887 = vmatprep.subr.bf16.mxu0 %v2070_v1 }
0x1349   :  { %v722_v15 = vpop.permute.xlu1 %721 }
0x134a   :  { %1840 = vmatmul.mubr.msk.bf16.vlgmr.msra.gmra.mrb[16].mxu1 %vm163_vm3, %v722_v15 }
0x134b   :  { %1856 = vmatpush3.bf16.msra.mxu1 %v2344_v9  ;;  %1859 = vmatprep.mubr.msk.bf16.mxu1 %vm2071_vm1, %v2070_v1 }
0x134c   :  { %1857 = vmatprep.subr.bf16.mxu1 %v2070_v1 }
0x134f   :  { %1858 = vmatpush3.bf16.msra.mxu1 %v2352_v14 }
0x1350   :  { %1863 = vmatprep.subr.bf16.mxu1 %v2070_v1 }
0x1352   :  { %1860 = vmatmul.mubr.bf16.vlgmr.msra.gmra.mrb[20].mxu1 %v2072_v11  ;;  %v135_v11 = vadd.f32 %v2236_v4, %v2185_v12 }
0x1353   :  { %1864 = vmatpush3.bf16.msra.mxu1 %v2344_v9  ;;  %1867 = vmatprep.mubr.msk.bf16.mxu1 %vm2071_vm1, %v2070_v1 }
0x1354   :  { %1865 = vmatprep.subr.bf16.mxu1 %v2070_v1 }
0x1357   :  { %1866 = vmatpush3.bf16.msra.mxu1 %v2352_v14 }
0x1358   :  { %1879 = vmatprep.subr.bf16.mxu1 %v2070_v1 }
0x13b8   :  { %v2370_v17 = vpop.f32.mrb[20].mxu0 }
0x13b9   :  { %v884_v19 = vpop.f32.mrb[21].mxu0 }
0x13ba   :  { %v2372_v20 = vpop.f32.mrb[22].mxu0  ;;  %v885_v3 = vadd.f32 %v2381_v26, %v884_v19 }
0x13bb   :  { %v2374_v21 = vpop.f32.mrb[23].mxu0 }
0x13bc   :  { %v888_v29 = vadd.f32 %v2381_v26, %v2374_v21 }
0x141d   :  { %v760_v22 = vpop.f32.mrb[16].mxu1 }
0x141e   :  { %v766_v23 = vadd.f32 %v760_v22, %v135_v11  ;;  %v1841_v24 = vpop.f32.mrb[17].mxu1 }
0x141f   :  { %v763_v13 = vpop.f32.mrb[18].mxu1 }
0x1420   :  { %v1842_v25 = vpop.f32.mrb[19].mxu1  ;;  %v1676_v43 = vmul.f32 -1.442695, %v766_v23 }
0x1425   :  { %v974_v27 = vpop.f32.mrb[20].mxu1 }
0x1426   :  { %v980_v28 = vadd.f32 %v974_v27, %v885_v3  ;;  %v1861_v10 = vpop.f32.mrb[21].mxu1 }
0x1427   :  { %v977_v30 = vpop.f32.mrb[22].mxu1 }
0x1428   :  { %1998 = vtanh.f32 %v980_v28  ;;  %v1862_v31 = vpop.f32.mrb[23].mxu1  ;;  %v1686_v12 = vmul.f32 -1.442695, %v980_v28 }
0x142a   :  { %2000 = vpow2.f32 %v1686_v12 }
0x1432   :  { %v1999_v5 = vpop.eup %1998 }
0x1433   :  { %990 = vrot.lane.b32.xlu0 %v1999_v5, %s2073_s12 }
0x1434   :  { %v2001_v4 = vpop.eup %2000 }
0x1435   :  { %v984_v32 = vadd.f32 1.0, %v2001_v4 }
0x1437   :  { %2002 = vrcp.f32 %v984_v32 }
0x1441   :  { %v2003_v33 = vpop.eup %2002 }
0x1442   :  { %v988_v38 = vmul.f32 0.0, %v2003_v33 }
0x14a5   :  { %v991_v34 = vpop.permute.xlu0 %990 }
0x14a6   :  { %v993_v36 = vmul.f32 %v2003_v33, %v991_v34  ;;  %v893_v34 = vadd.f32 %v2370_v17, %v2381_v26 }
0x14a8   :  { %995 = vrot.lane.b32.xlu1 %v993_v36, %s2073_s12 }
0x151a   :  { %v996_v39 = vpop.permute.xlu1 %995 }
0x151b   :  { %v998_v40 = vadd.f32 %v996_v39, %v988_v38 }
0x151d   :  { %2004 = vtanh.f32 %v998_v40 }
0x151e   :  { %2006 = vtanh.f32 %v766_v23 }
0x151f   :  { %2008 = vpow2.f32 %v1676_v43 }
0x1527   :  { %v2005_v41 = vpop.eup %2004 }
0x1528   :  { %1001 = vrot.lane.b32.xlu0 %v2005_v41, %s2073_s12  ;;  %v2007_v42 = vpop.eup %2006 }
0x1529   :  { %v2009_v44 = vpop.eup %2008 }
0x152a   :  { %v770_v45 = vadd.f32 1.0, %v2009_v44 }
0x152c   :  { %776 = vrot.lane.b32.xlu0 %v2007_v42, %s2073_s12  ;;  %2010 = vrcp.f32 %v770_v45 }
0x1536   :  { %v2011_v48 = vpop.eup %2010 }
0x1537   :  { %v774_v0 = vmul.f32 %v2011_v48, %v2316_v54 }
0x159a   :  { %v1002_v16 = vpop.permute.xlu0 %1001 }
0x159b   :  { %v2388_v46 = vmul.f32 %v2003_v33, %v1002_v16 }
0x159d   :  { %v1011_v47 = vpack.c.bf16 %v2388_v46, %v2388_v46 }
0x159e   :  { %v777_v49 = vpop.permute.xlu0 %776 }
0x159f   :  { %v779_v51 = vmul.f32 %v2011_v48, %v777_v49  ;;  %1013 = vrot.lane.b32.xlu1 %v1011_v47, %s2074_s3 }
0x15a1   :  { %781 = vrot.lane.b32.xlu0 %v779_v51, %s2073_s12 }
0x1611   :  { %v1014_v52 = vpop.permute.xlu1 %1013 }
0x1612   :  { %1868 = vmatmul.mubr.msk.bf16.vlgmr.msra.gmra.mrb[24].mxu1 %vm163_vm3, %v1014_v52 }
0x1613   :  { %v782_v53 = vpop.permute.xlu0 %781  ;;  %1880 = vmatpush3.bf16.msra.mxu1 %v2344_v9  ;;  %1883 = vmatprep.mubr.msk.bf16.mxu1 %vm2071_vm1, %v2070_v1 }
0x1614   :  { %v2399_v55 = vadd.f32 %v782_v53, %v774_v0  ;;  %1881 = vmatprep.subr.bf16.mxu1 %v2070_v1 }
0x1616   :  { %2012 = vtanh.f32 %v2399_v55 }
0x1617   :  { %1882 = vmatpush3.bf16.msra.mxu1 %v2352_v14 }
0x1618   :  { %1895 = vmatprep.subr.bf16.mxu1 %v2070_v1 }
0x1620   :  { %v2013_v56 = vpop.eup %2012 }
0x1621   :  { %787 = vrot.lane.b32.xlu0 %v2013_v56, %s2073_s12 }
0x1625   :  { %552 = vrot.lane.b32.xlu0 %v2285_v18, %s2074_s3 }
0x1629   :  { %712 = vrot.lane.b32.xlu0 %v2333_v59, %s2074_s3 }
0x1693   :  { %v788_v54 = vpop.permute.xlu0 %787 }
0x1694   :  { %v790_v22 = vmul.f32 %v2011_v48, %v788_v54 }
0x1697   :  { %v553_v57 = vpop.permute.xlu0 %552 }
0x1698   :  { %556 = vst.msk [vmem:[#allocation3 + $0x20] sm:$0xff] %vm163_vm3, %v553_v57  ;;  %v896_v57 = vadd.f32 %v2372_v20, %v2381_v26 }
0x169b   :  { %v713_v35 = vpop.permute.xlu0 %712 }
0x169c   :  { %716 = vst.msk [vmem:[#allocation3 + $0x30] sm:$0xff] %vm163_vm3, %v713_v35 }
0x16a3   :  { %v809_v10 = vld [vmem:[#allocation3 + $0x30] sm:$0xff] }
0x16e5   :  { %v1052_v58 = vpop.f32.mrb[24].mxu1 }
0x16e6   :  { %v1058_v60 = vadd.f32 %v1052_v58, %v888_v29  ;;  %v1869_v61 = vpop.f32.mrb[25].mxu1 }
0x16e7   :  { %v1055_v63 = vpop.f32.mrb[26].mxu1 }
0x16e8   :  { %2014 = vtanh.f32 %v1058_v60  ;;  %v1870_v6 = vpop.f32.mrb[27].mxu1  ;;  %v1688_v59 = vmul.f32 -1.442695, %v1058_v60 }
0x16ea   :  { %2016 = vpow2.f32 %v1688_v59 }
0x16f2   :  { %v2015_v18 = vpop.eup %2014 }
0x16f3   :  { %1068 = vrot.lane.b32.xlu1 %v2015_v18, %s2073_s12 }
0x16f4   :  { %v2017_v7 = vpop.eup %2016 }
0x16f5   :  { %v1062_v62 = vadd.f32 1.0, %v2017_v7 }
0x16f7   :  { %2018 = vrcp.f32 %v1062_v62 }
0x1701   :  { %v2019_v50 = vpop.eup %2018 }
0x1702   :  { %v1066_v15 = vmul.f32 %v2019_v50, %v998_v40 }
0x1765   :  { %v1069_v8 = vpop.permute.xlu1 %1068 }
0x1766   :  { %v1071_v2 = vmul.f32 %v2019_v50, %v1069_v8 }
0x1768   :  { %1073 = vrot.lane.b32.xlu1 %v1071_v2, %s2073_s12 }
0x17da   :  { %v1074_v19 = vpop.permute.xlu1 %1073 }
0x17db   :  { %v1076_v21 = vadd.f32 %v1074_v19, %v1066_v15 }
0x17dd   :  { %2020 = vtanh.f32 %v1076_v21 }
0x17e7   :  { %v2021_v11 = vpop.eup %2020 }
0x17e8   :  { %1079 = vrot.lane.b32.xlu1 %v2021_v11, %s2073_s12 }
0x17ec   :  { %632 = vrot.lane.b32.xlu1 %v2302_v37, %s2074_s3  ;;  %v807_v37 = vld [vmem:[#allocation3 + $0x20] sm:$0xff] }
0x17f0   :  { %792 = vrot.lane.b32.xlu1 %v790_v22, %s2074_s3 }
0x185a   :  { %v1080_v23 = vpop.permute.xlu1 %1079 }
0x185b   :  { %v2420_v24 = vmul.f32 %v2019_v50, %v1080_v23 }
0x185d   :  { %v1090_v13 = vpack.c.bf16 %v2420_v24, %v2420_v24 }
0x185e   :  { %v633_v25 = vpop.permute.xlu1 %632 }
0x185f   :  { %636 = vst.msk [vmem:[#allocation3 + $0x28] sm:$0xff] %vm163_vm3, %v633_v25  ;;  %1092 = vrot.lane.b32.xlu0 %v1090_v13, %s2074_s3 }
0x1862   :  { %v793_v3 = vpop.permute.xlu1 %792 }
0x1863   :  { %796 = vst.msk [vmem:[#allocation3 + $0x38] sm:$0xff] %vm163_vm3, %v793_v3  ;;  %797 = vst.msk [vmem:[%s2575_s10] sm:$0xff] %vm163_vm3, %v793_v3 }
0x1866   :  { %v808_v27 = vld [vmem:[#allocation3 + $0x28] sm:$0xff] }
0x1867   :  { %v813_v28 = vpack.c.bf16 %v808_v27, %v807_v37 }
0x1869   :  { %1851 = vmatprep.mubr.msk.bf16.mxu0 %vm163_vm3, %v813_v28 }
0x186a   :  { %v810_v30 = vld [vmem:[#allocation3 + $0x38] sm:$0xff] }
0x186b   :  { %v814_v31 = vpack.c.bf16 %v810_v30, %v809_v10 }
0x186d   :  { %1852 = vmatmul.mubr.msk.bf16.gmra.mrb[24].mxu0 %vm163_vm3, %v814_v31 }
0x186e   :  { %1875 = vmatprep.mubr.msk.bf16.mxu0 %vm2071_vm1, %v2070_v1 }
0x18d1   :  { %v1093_v5 = vpop.permute.xlu0 %1092 }
0x18d2   :  { %1876 = vmatmul.mubr.msk.bf16.vlgmr.msra.gmra.mrb[28].mxu0 %vm163_vm3, %v1093_v5 }
0x18d3   :  { %1888 = vmatpush3.bf16.msra.mxu0 %v2344_v9  ;;  %1891 = vmatprep.mubr.msk.bf16.mxu0 %vm2071_vm1, %v2070_v1 }
0x18d4   :  { %1889 = vmatprep.subr.bf16.mxu0 %v2070_v1 }
0x18d7   :  { %1890 = vmatpush3.bf16.msra.mxu0 %v2352_v14 }
0x18d8   :  { %1903 = vmatprep.subr.bf16.mxu0 %v2070_v1 }
0x1940   :  { %v2442_v12 = vpop.f32.mrb[24].mxu0 }
0x1941   :  { %v2444_v4 = vpop.f32.mrb[25].mxu0 }
0x1942   :  { %v2446_v32 = vpop.f32.mrb[26].mxu0  ;;  %v901_v23 = vadd.f32 %v2381_v26, %v2444_v4 }
0x1943   :  { %v2448_v33 = vpop.f32.mrb[27].mxu0 }
0x19a5   :  { %v1131_v36 = vpop.f32.mrb[28].mxu0 }
0x19a6   :  { %v1137_v38 = vadd.f32 %v1131_v36, %v893_v34  ;;  %v1877_v39 = vpop.f32.mrb[29].mxu0 }
0x19a7   :  { %v1134_v40 = vpop.f32.mrb[30].mxu0 }
0x19a8   :  { %2022 = vtanh.f32 %v1137_v38  ;;  %v1878_v41 = vpop.f32.mrb[31].mxu0  ;;  %v1690_v43 = vmul.f32 -1.442695, %v1137_v38 }
0x19aa   :  { %2024 = vpow2.f32 %v1690_v43 }
0x19b2   :  { %v2023_v42 = vpop.eup %2022 }
0x19b3   :  { %1147 = vrot.lane.b32.xlu1 %v2023_v42, %s2073_s12 }
0x19b4   :  { %v2025_v44 = vpop.eup %2024 }
0x19b5   :  { %v1141_v45 = vadd.f32 1.0, %v2025_v44 }
0x19b7   :  { %2026 = vrcp.f32 %v1141_v45  ;;  %v904_v45 = vadd.f32 %v2381_v26, %v2448_v33 }
0x19c1   :  { %v2027_v16 = vpop.eup %2026 }
0x19c2   :  { %v1145_v17 = vmul.f32 %v2027_v16, %v1076_v21 }
0x1a25   :  { %v1148_v47 = vpop.permute.xlu1 %1147 }
0x1a26   :  { %v1150_v48 = vmul.f32 %v2027_v16, %v1148_v47 }
0x1a28   :  { %1152 = vrot.lane.b32.xlu0 %v1150_v48, %s2073_s12 }
0x1a9a   :  { %v1153_v49 = vpop.permute.xlu0 %1152 }
0x1a9b   :  { %v1155_v51 = vadd.f32 %v1153_v49, %v1145_v17 }
0x1a9d   :  { %2028 = vtanh.f32 %v1155_v51 }
0x1aa7   :  { %v2029_v52 = vpop.eup %2028 }
0x1aa8   :  { %1158 = vrot.lane.b32.xlu1 %v2029_v52, %s2073_s12 }
0x1b1a   :  { %v1159_v0 = vpop.permute.xlu1 %1158 }
0x1b1b   :  { %v2455_v53 = vmul.f32 %v2027_v16, %v1159_v0 }
0x1b1d   :  { %v1169_v56 = vpack.c.bf16 %v2455_v53, %v2455_v53 }
0x1b1f   :  { %1171 = vrot.lane.b32.xlu0 %v1169_v56, %s2074_s3 }
0x1b91   :  { %v1172_v54 = vpop.permute.xlu0 %1171 }
0x1b92   :  { %1884 = vmatmul.mubr.msk.bf16.vlgmr.msra.gmra.mrb[28].mxu1 %vm163_vm3, %v1172_v54 }
0x1b93   :  { %1896 = vmatpush3.bf16.msra.mxu1 %v2344_v9  ;;  %1899 = vmatprep.mubr.msk.bf16.mxu1 %vm2071_vm1, %v2070_v1 }
0x1b94   :  { %1897 = vmatprep.subr.bf16.mxu1 %v2070_v1 }
0x1b97   :  { %1898 = vmatpush3.bf16.msra.mxu1 %v2352_v14 }
0x1b98   :  { %1911 = vmatprep.subr.bf16.mxu1 %v2070_v1 }
0x1c65   :  { %v1210_v35 = vpop.f32.mrb[28].mxu1 }
0x1c66   :  { %v1216_v29 = vadd.f32 %v1210_v35, %v896_v57  ;;  %v1885_v58 = vpop.f32.mrb[29].mxu1 }
0x1c67   :  { %v1213_v60 = vpop.f32.mrb[30].mxu1 }
0x1c68   :  { %2030 = vtanh.f32 %v1216_v29  ;;  %v1886_v61 = vpop.f32.mrb[31].mxu1  ;;  %v1692_v6 = vmul.f32 -1.442695, %v1216_v29 }
0x1c6a   :  { %2032 = vpow2.f32 %v1692_v6  ;;  %v909_v6 = vadd.f32 %v2442_v12, %v2381_v26 }
0x1c72   :  { %v2031_v63 = vpop.eup %2030 }
0x1c73   :  { %1226 = vrot.lane.b32.xlu1 %v2031_v63, %s2073_s12 }
0x1c74   :  { %v2033_v18 = vpop.eup %2032 }
0x1c75   :  { %v1220_v59 = vadd.f32 1.0, %v2033_v18 }
0x1c77   :  { %2034 = vrcp.f32 %v1220_v59 }
0x1c81   :  { %v2035_v7 = vpop.eup %2034 }
0x1c82   :  { %v1224_v20 = vmul.f32 %v2035_v7, %v1155_v51 }
0x1ce5   :  { %v1227_v62 = vpop.permute.xlu1 %1226 }
0x1ce6   :  { %v1229_v50 = vmul.f32 %v2035_v7, %v1227_v62 }
0x1ce8   :  { %1231 = vrot.lane.b32.xlu0 %v1229_v50, %s2073_s12 }
0x1d5a   :  { %v1232_v8 = vpop.permute.xlu0 %1231 }
0x1d5b   :  { %v1234_v2 = vadd.f32 %v1232_v8, %v1224_v20 }
0x1d5d   :  { %2036 = vtanh.f32 %v1234_v2 }
0x1d67   :  { %v2037_v15 = vpop.eup %2036 }
0x1d68   :  { %1237 = vrot.lane.b32.xlu1 %v2037_v15, %s2073_s12 }
0x1dda   :  { %v1238_v19 = vpop.permute.xlu1 %1237 }
0x1ddb   :  { %v2472_v21 = vmul.f32 %v2035_v7, %v1238_v19 }
0x1ddd   :  { %v1248_v11 = vpack.c.bf16 %v2472_v21, %v2472_v21 }
0x1ddf   :  { %1250 = vrot.lane.b32.xlu0 %v1248_v11, %s2074_s3 }
0x1e51   :  { %v1251_v22 = vpop.permute.xlu0 %1250 }
0x1e52   :  { %1892 = vmatmul.mubr.msk.bf16.vlgmr.msra.gmra.mrb[32].mxu0 %vm163_vm3, %v1251_v22 }
0x1e53   :  { %1904 = vmatpush3.bf16.msra.mxu0 %v2344_v9  ;;  %1907 = vmatprep.mubr.msk.bf16.mxu0 %vm2071_vm1, %v2070_v1 }
0x1e54   :  { %1905 = vmatprep.subr.bf16.mxu0 %v2070_v1 }
0x1e57   :  { %1906 = vmatpush3.bf16.msra.mxu0 %v2352_v14 }
0x1e58   :  { %1919 = vmatprep.subr.bf16.mxu0 %v2070_v1 }
0x1f25   :  { %v1289_v13 = vpop.f32.mrb[32].mxu0 }
0x1f26   :  { %v1295_v25 = vadd.f32 %v1289_v13, %v901_v23  ;;  %v1893_v3 = vpop.f32.mrb[33].mxu0 }
0x1f27   :  { %v1292_v37 = vpop.f32.mrb[34].mxu0 }
0x1f28   :  { %2038 = vtanh.f32 %v1295_v25  ;;  %v1894_v27 = vpop.f32.mrb[35].mxu0  ;;  %v1694_v10 = vmul.f32 -1.442695, %v1295_v25 }
0x1f2a   :  { %2040 = vpow2.f32 %v1694_v10  ;;  %v912_v10 = vadd.f32 %v2446_v32, %v2381_v26 }
0x1f32   :  { %v2039_v28 = vpop.eup %2038 }
0x1f33   :  { %1305 = vrot.lane.b32.xlu1 %v2039_v28, %s2073_s12 }
0x1f34   :  { %v2041_v30 = vpop.eup %2040 }
0x1f35   :  { %v1299_v31 = vadd.f32 1.0, %v2041_v30 }
0x1f37   :  { %2042 = vrcp.f32 %v1299_v31 }
0x1f41   :  { %v2043_v5 = vpop.eup %2042 }
0x1f42   :  { %v1303_v4 = vmul.f32 %v2043_v5, %v1234_v2 }
0x1fa5   :  { %v1306_v34 = vpop.permute.xlu1 %1305 }
0x1fa6   :  { %v1308_v36 = vmul.f32 %v2043_v5, %v1306_v34 }
0x1fa8   :  { %1310 = vrot.lane.b32.xlu0 %v1308_v36, %s2073_s12 }
0x201a   :  { %v1311_v38 = vpop.permute.xlu0 %1310 }
0x201b   :  { %v1313_v39 = vadd.f32 %v1311_v38, %v1303_v4 }
0x201d   :  { %2044 = vtanh.f32 %v1313_v39 }
0x2027   :  { %v2045_v40 = vpop.eup %2044 }
0x2028   :  { %1316 = vrot.lane.b32.xlu1 %v2045_v40, %s2073_s12 }
0x209a   :  { %v1317_v41 = vpop.permute.xlu1 %1316 }
0x209b   :  { %v2489_v42 = vmul.f32 %v2043_v5, %v1317_v41 }
0x209d   :  { %v1327_v43 = vpack.c.bf16 %v2489_v42, %v2489_v42 }
0x209f   :  { %1329 = vrot.lane.b32.xlu0 %v1327_v43, %s2074_s3 }
0x2111   :  { %v1330_v44 = vpop.permute.xlu0 %1329 }
0x2112   :  { %1900 = vmatmul.mubr.msk.bf16.vlgmr.msra.gmra.mrb[32].mxu1 %vm163_vm3, %v1330_v44 }
0x2113   :  { %1912 = vmatpush3.bf16.msra.mxu1 %v2344_v9  ;;  %1915 = vmatprep.mubr.msk.bf16.mxu1 %vm2071_vm1, %v2070_v1 }
0x2114   :  { %1913 = vmatprep.subr.bf16.mxu1 %v2070_v1 }
0x2117   :  { %1914 = vmatpush3.bf16.msra.mxu1 %v2352_v14 }
0x21e5   :  { %v1368_v16 = vpop.f32.mrb[32].mxu1 }
0x21e6   :  { %v1374_v47 = vadd.f32 %v1368_v16, %v904_v45  ;;  %v1901_v48 = vpop.f32.mrb[33].mxu1 }
0x21e7   :  { %v1371_v17 = vpop.f32.mrb[34].mxu1 }
0x21e8   :  { %2046 = vtanh.f32 %v1374_v47  ;;  %v1902_v49 = vpop.f32.mrb[35].mxu1  ;;  %v1696_v9 = vmul.f32 -1.442695, %v1374_v47  ;;  %v1940_v17 = vld [vmem:[%s2577_s7] sm:$0xff]  }
0x21e9   :  { %v1941_v49 = vld [vmem:[%s2577_s7 + $0x8] sm:$0xff]  }
0x21ea   :  { %2048 = vpow2.f32 %v1696_v9 }
0x21f2   :  { %v2047_v51 = vpop.eup %2046 }
0x21f3   :  { %1384 = vrot.lane.b32.xlu1 %v2047_v51, %s2073_s12 }
0x21f4   :  { %v2049_v52 = vpop.eup %2048 }
0x21f5   :  { %v1378_v0 = vadd.f32 1.0, %v2049_v52 }
0x21f7   :  { %2050 = vrcp.f32 %v1378_v0 }
0x2201   :  { %v2051_v56 = vpop.eup %2050 }
0x2202   :  { %v1382_v33 = vmul.f32 %v2051_v56, %v1313_v39 }
0x2265   :  { %v1385_v54 = vpop.permute.xlu1 %1384 }
0x2266   :  { %v1387_v14 = vmul.f32 %v2051_v56, %v1385_v54 }
0x2268   :  { %1389 = vrot.lane.b32.xlu0 %v1387_v14, %s2073_s12 }
0x22da   :  { %v1390_v57 = vpop.permute.xlu0 %1389 }
0x22db   :  { %v1392_v35 = vadd.f32 %v1390_v57, %v1382_v33 }
0x22dd   :  { %2052 = vtanh.f32 %v1392_v35 }
0x22e7   :  { %v2053_v29 = vpop.eup %2052 }
0x22e8   :  { %1395 = vrot.lane.b32.xlu1 %v2053_v29, %s2073_s12 }
0x235a   :  { %v1396_v58 = vpop.permute.xlu1 %1395 }
0x235b   :  { %v1398_v60 = vmul.f32 %v2051_v56, %v1396_v58 }
0x235d   :  { %v1406_v61 = vpack.c.bf16 %v1398_v60, %v1398_v60 }
0x235f   :  { %1408 = vrot.lane.b32.xlu0 %v1406_v61, %s2074_s3 }
0x23d1   :  { %v1409_v63 = vpop.permute.xlu0 %1408 }
0x23d2   :  { %1908 = vmatmul.mubr.msk.bf16.vlgmr.msra.gmra.mrb[36].mxu0 %vm163_vm3, %v1409_v63 }
0x23d3   :  { %1923 = vmatprep.mubr.msk.bf16.mxu0 %vm2071_vm1, %v2070_v1  ;;  %1920 = vmatpush3.bf16.msra.mxu0 %v1940_v17 }
0x23d4   :  { %1921 = vmatprep.subr.bf16.mxu0 %v2070_v1 }
0x23d7   :  { %1922 = vmatpush3.bf16.msra.mxu0 %v1941_v49 }
0x24a5   :  { %v1447_v18 = vpop.f32.mrb[36].mxu0 }
0x24a6   :  { %v1453_v59 = vadd.f32 %v1447_v18, %v909_v6  ;;  %v1909_v7 = vpop.f32.mrb[37].mxu0 }
0x24a7   :  { %v1450_v62 = vpop.f32.mrb[38].mxu0 }
0x24a8   :  { %2054 = vtanh.f32 %v1453_v59  ;;  %v1910_v50 = vpop.f32.mrb[39].mxu0  ;;  %v1698_v8 = vmul.f32 -1.442695, %v1453_v59 }
0x24aa   :  { %2056 = vpow2.f32 %v1698_v8 }
0x24b2   :  { %v2055_v20 = vpop.eup %2054 }
0x24b3   :  { %1463 = vrot.lane.b32.xlu1 %v2055_v20, %s2073_s12 }
0x24b4   :  { %v2057_v2 = vpop.eup %2056 }
0x24b5   :  { %v1457_v15 = vadd.f32 1.0, %v2057_v2 }
0x24b7   :  { %2058 = vrcp.f32 %v1457_v15 }
0x24c1   :  { %v2059_v19 = vpop.eup %2058 }
0x24c2   :  { %v1461_v12 = vmul.f32 %v2059_v19, %v1392_v35 }
0x2525   :  { %v1464_v11 = vpop.permute.xlu1 %1463 }
0x2526   :  { %v1466_v22 = vmul.f32 %v2059_v19, %v1464_v11 }
0x2528   :  { %1468 = vrot.lane.b32.xlu0 %v1466_v22, %s2073_s12 }
0x259a   :  { %v1469_v23 = vpop.permute.xlu0 %1468 }
0x259b   :  { %v1471_v13 = vadd.f32 %v1469_v23, %v1461_v12 }
0x259d   :  { %2060 = vtanh.f32 %v1471_v13 }
0x25a7   :  { %v2061_v25 = vpop.eup %2060 }
0x25a8   :  { %1474 = vrot.lane.b32.xlu1 %v2061_v25, %s2073_s12 }
0x261a   :  { %v1475_v3 = vpop.permute.xlu1 %1474 }
0x261b   :  { %v1477_v37 = vmul.f32 %v2059_v19, %v1475_v3 }
0x261d   :  { %v1485_v27 = vpack.c.bf16 %v1477_v37, %v1477_v37 }
0x261f   :  { %1487 = vrot.lane.b32.xlu0 %v1485_v27, %s2074_s3 }
0x2691   :  { %v1488_v28 = vpop.permute.xlu0 %1487 }
0x2692   :  { %1916 = vmatmul.mubr.msk.bf16.vlgmr.msra.gmra.mrb[36].mxu1 %vm163_vm3, %v1488_v28 }
0x2765   :  { %v1526_v30 = vpop.f32.mrb[36].mxu1 }
0x2766   :  { %v1532_v31 = vadd.f32 %v1526_v30, %v912_v10  ;;  %v1917_v5 = vpop.f32.mrb[37].mxu1 }
0x2767   :  { %v1529_v34 = vpop.f32.mrb[38].mxu1 }
0x2768   :  { %2062 = vtanh.f32 %v1532_v31  ;;  %v1918_v36 = vpop.f32.mrb[39].mxu1  ;;  %v1700_v38 = vmul.f32 -1.442695, %v1532_v31 }
0x276a   :  { %2064 = vpow2.f32 %v1700_v38 }
0x2772   :  { %v2063_v4 = vpop.eup %2062 }
0x2773   :  { %1542 = vrot.lane.b32.xlu1 %v2063_v4, %s2073_s12 }
0x2774   :  { %v2065_v39 = vpop.eup %2064 }
0x2775   :  { %v1536_v40 = vadd.f32 1.0, %v2065_v39 }
0x2777   :  { %2066 = vrcp.f32 %v1536_v40 }
0x2781   :  { %v2067_v41 = vpop.eup %2066 }
0x2782   :  { %v1540_v26 = vmul.f32 %v2067_v41, %v1471_v13 }
0x27e5   :  { %v1543_v43 = vpop.permute.xlu1 %1542 }
0x27e6   :  { %v1545_v44 = vmul.f32 %v2067_v41, %v1543_v43 }
0x27e8   :  { %1547 = vrot.lane.b32.xlu0 %v1545_v44, %s2073_s12 }
0x27ec   :  { %1479 = vrot.lane.b32.xlu0 %v1477_v37, %s2074_s3 }
0x27f0   :  { %799 = vrot.lane.b32.xlu0 %v2399_v55, %s2075_s28 }
0x27f4   :  { %1084 = vrot.lane.b32.xlu0 %v2420_v24, %s2074_s3 }
0x27f8   :  { %1242 = vrot.lane.b32.xlu0 %v2472_v21, %s2074_s3 }
0x27fc   :  { %1400 = vrot.lane.b32.xlu0 %v1398_v60, %s2074_s3 }
0x285a   :  { %v1548_v32 = vpop.permute.xlu0 %1547 }
0x285b   :  { %v1550_v45 = vadd.f32 %v1548_v32, %v1540_v26 }
0x285d   :  { %2068 = vtanh.f32 %v1550_v45 }
0x285e   :  { %v1480_v16 = vpop.permute.xlu0 %1479 }
0x285f   :  { %1483 = vst.msk [vmem:[#allocation4 + $0x30] sm:$0xff] %vm163_vm3, %v1480_v16 }
0x2862   :  { %v800_v47 = vpop.permute.xlu0 %799 }
0x2863   :  { %802 = vst.msk [vmem:[%s2576_s11] sm:$0xff] %vm163_vm3, %v800_v47 }
0x2866   :  { %v1085_v55 = vpop.permute.xlu0 %1084  ;;  %v1571_v56 = vld [vmem:[#allocation4 + $0x30] sm:$0xff] }
0x2867   :  { %v2069_v24 = vpop.eup %2068 }
0x2868   :  { %1553 = vrot.lane.b32.xlu1 %v2069_v24, %s2073_s12 }
0x286a   :  { %v1243_v21 = vpop.permute.xlu0 %1242 }
0x286e   :  { %v1401_v48 = vpop.permute.xlu0 %1400 }
0x28da   :  { %v1554_v51 = vpop.permute.xlu1 %1553 }
0x28db   :  { %v1556_v9 = vmul.f32 %v2067_v41, %v1554_v51 }
0x28dd   :  { %1558 = vrot.lane.b32.xlu1 %v1556_v9, %s2074_s3 }
0x28e1   :  { %1006 = vrot.lane.b32.xlu1 %v2388_v46, %s2074_s3 }
0x28e5   :  { %1163 = vrot.lane.b32.xlu1 %v2455_v53, %s2074_s3 }
0x28e9   :  { %1321 = vrot.lane.b32.xlu1 %v2489_v42, %s2074_s3  ;;  %v1703_v42 = vld [vmem:[%s2578_s8] ss:$0 sm:$0xff] }
0x28ed   :  { %1566 = vrot.lane.b32.xlu1 %v1550_v45, %s2075_s28 }
0x294f   :  { %v1559_v1 = vpop.permute.xlu1 %1558 }
0x2950   :  { %1562 = vst.msk [vmem:[#allocation4 + $0x38] sm:$0xff] %vm163_vm3, %v1559_v1  ;;  %1701 = vst.msk [vmem:[%s2575_s10 + $0x8] sm:$0xff] %vm163_vm3, %v1559_v1 }
0x2953   :  { %v1007_v52 = vpop.permute.xlu1 %1006 }
0x2957   :  { %v1164_v0 = vpop.permute.xlu1 %1163  ;;  %v1572_v46 = vld [vmem:[#allocation4 + $0x38] sm:$0xff] }
0x2958   :  { %v1573_v54 = vpack.c.bf16 %v1572_v46, %v1571_v56 }
0x295a   :  { %1924 = vmatmul.mubr.msk.bf16.vlgmr.msra.gmra.mrb[40].mxu0 %vm163_vm3, %v1573_v54 }
0x295b   :  { %v1322_v53 = vpop.permute.xlu1 %1321 }
0x295f   :  { %v1567_v14 = vpop.permute.xlu1 %1566 }
0x2960   :  { %1702 = vst.msk [vmem:[%s2576_s11 + $0x8] sm:$0xff] %vm163_vm3, %v1567_v14 }
0x2a2d   :  { %v1634_v33 = vpop.f32.mrb[40].mxu0 }
0x2a2e   :  { %v1635_v57 = vadd.f32 %v1703_v42, %v1634_v33  ;;  %v1925_v35 = vpop.f32.mrb[41].mxu0 }
0x2a2f   :  { %v1637_v29 = vpop.f32.mrb[42].mxu0 }
0x2a30   :  { %1641 = vst [vmem:[%s2579_s9] sm:$0xff] %v1635_v57  ;;  %v1638_v58 = vadd.f32 %v1703_v42, %v1637_v29  ;;  %v1926_v60 = vpop.f32.mrb[43].mxu0 }
0x2a32   :  { %1642 = vst [vmem:[%s2579_s9 + $0x8] sm:$0xff] %v1638_v58 }

</bundles_post_ra>
